<compile_context>
chip_gen: v5e
topology: v5e:2x2
jax: 0.10.0
libtpu: 0.0.40
codegen_flags: <defaults>
</compile_context>

<pallas_src>
import numpy as np
import jax
import jax.numpy as jnp
from jax import lax
from jax.experimental import pallas as pl
from jax.experimental.pallas import tpu as pltpu


_MIN_GRID_STEPS = 4        # keep >= 4 grid steps so v7x's 2 TensorCores stay busy
_MAX_MODES_PER_STEP = 8    # cap on unrolled per-step dots (code size / scratch)


def _round_up(v, m):
    return ((v + m - 1) // m) * m


def _vmem_limit_bytes():
    # v5e/v6e: 128 MiB physical -> 96 MiB limit; v7x: 64 MiB physical -> 48 MiB.
    try:
        cap = pltpu.get_tpu_info().vmem_capacity_bytes
    except Exception:
        cap = 64 * 1024 * 1024            # conservative fallback (v7x per-TC VMEM)
    return int(min(cap * 3 // 4, 96 * 1024 * 1024))


def _plan_tiles(M, Ci, Co, S, in_itemsize, out_itemsize):
    """Chip-aware tiling plan: (modes-per-step G, M_pad, s_tile, n_s, S_pad)."""
    limit = _vmem_limit_bytes()
    # Resident weights (wr + wi, [M_pad, Co, Ci]) with sublane/lane padding,
    # counted at 2 buffers each as a safety margin.
    # TODO(synk): for very large M*Ci*Co the resident-weight assumption breaks;
    #             those sizes would need a weight-tiled grid axis instead.
    w_bytes = (2 * 2 * (M + _MAX_MODES_PER_STEP)
               * _round_up(Co, 8) * _round_up(Ci, 128) * in_itemsize)
    # Half the VMEM limit for the double-buffered pipeline blocks; the rest is
    # headroom for in-kernel f32 accumulators and compiler scratch.
    budget = max(2 * 1024 * 1024, limit // 2 - w_bytes)

    per_lane = 2 * Ci * in_itemsize + 2 * Co * out_itemsize   # xr+xi in, or+oi out
    s_pad128 = _round_up(S, 128)
    nb = s_pad128 // 128                                      # 128-lane blocks in S

    # Number of S tiles: enough that a double-buffered block fits the budget ...
    n_s = max(1, pl.cdiv(2 * per_lane * s_pad128, budget))
    # ... and, if the mode axis alone cannot feed both cores, split S further.
    if M < _MIN_GRID_STEPS:
        n_s = max(n_s, min(nb, pl.cdiv(_MIN_GRID_STEPS, M)))
    n_s = min(n_s, nb)
    blocks_per_tile = pl.cdiv(nb, n_s)
    s_tile = blocks_per_tile * 128
    n_s = pl.cdiv(nb, blocks_per_tile)
    s_pad = n_s * s_tile              # padding waste vs. s_pad128 is < n_s*128 lanes

    # Modes per grid step: amortize per-step overhead, but keep >= _MIN_GRID_STEPS
    # total steps and stay inside the VMEM budget.
    step_bytes = 2 * per_lane * s_tile
    g = min(max(1, budget // step_bytes),
            max(1, (M * n_s) // _MIN_GRID_STEPS),
            M, _MAX_MODES_PER_STEP)
    g = max(1, g)
    m_pad = _round_up(M, g)
    return int(g), int(m_pad), int(s_tile), int(n_s), int(s_pad)


# ----------------------------------------------------------------------------
# Pallas kernel: per-(mode-block, S-tile) complex channel mixing.
#   xr_ref/xi_ref : [G, Ci, s_tile]   real / imag spectrum blocks
#   wr_ref/wi_ref : [M_pad, Co, Ci]   VMEM-resident weights for ALL modes
#   or_ref/oi_ref : [G, Co, s_tile]   real / imag output blocks
# Complex block matmul (wr + i*wi)^T @ (xr + i*xi), accumulated in f32.
# ----------------------------------------------------------------------------
def _mix_kernel(xr_ref, xi_ref, wr_ref, wi_ref, or_ref, oi_ref):
    mb = pl.program_id(0)
    G = xr_ref.shape[0]

    def mix_one(g):
        m = mb * G + g
        wr = wr_ref[m]                    # [Co, Ci]
        wi = wi_ref[m]
        xr = xr_ref[g]                    # [Ci, s_tile]
        xi = xi_ref[g]
        o_r = (jnp.dot(wr, xr, preferred_element_type=jnp.float32)
               - jnp.dot(wi, xi, preferred_element_type=jnp.float32))
        o_i = (jnp.dot(wi, xr, preferred_element_type=jnp.float32)
               + jnp.dot(wr, xi, preferred_element_type=jnp.float32))
        or_ref[g] = o_r.astype(or_ref.dtype)
        oi_ref[g] = o_i.astype(oi_ref.dtype)

    if G == 1:
        mix_one(0)
    else:
        def body(g, carry):
            mix_one(g)
            return carry
        lax.fori_loop(0, G, body, 0, unroll=True)


def _complex_mix(xr, xi, wr, wi, g_modes, s_tile, out_dtype):
    """xr/xi: [M_pad, Ci, S_pad]; wr/wi: [M_pad, Co, Ci] -> (o_r, o_i)."""
    m_pad, ci, s_pad = xr.shape
    co = wr.shape[1]
    n_mb = m_pad // g_modes
    n_s = s_pad // s_tile

    flops = 8 * m_pad * co * ci * s_pad            # four 2*Co*Ci*S dots per mode
    bytes_accessed = ((xr.size + xi.size) * xr.dtype.itemsize
                      + (wr.size + wi.size) * wr.dtype.itemsize
                      + 2 * m_pad * co * s_pad * jnp.dtype(out_dtype).itemsize)

    # TODO(synk): if xprof shows exposed input DMA on v5e, add
    #             pipeline_mode=pl.Buffered(3) to x_spec (VMEM headroom allows).
    x_spec = pl.BlockSpec((g_modes, ci, s_tile), lambda mb, s: (mb, 0, s))
    w_spec = pl.BlockSpec((m_pad, co, ci), lambda mb, s: (0, 0, 0))   # VMEM-resident
    o_spec = pl.BlockSpec((g_modes, co, s_tile), lambda mb, s: (mb, 0, s))

    grid_spec = pltpu.PrefetchScalarGridSpec(
        num_scalar_prefetch=0,
        grid=(n_mb, n_s),
        in_specs=[x_spec, x_spec, w_spec, w_spec],
        out_specs=[o_spec, o_spec],
    )
    return pl.pallas_call(
        _mix_kernel,
        out_shape=(jax.ShapeDtypeStruct((m_pad, co, s_pad), out_dtype),
                   jax.ShapeDtypeStruct((m_pad, co, s_pad), out_dtype)),
        grid_spec=grid_spec,
        compiler_params=pltpu.CompilerParams(
            dimension_semantics=("parallel", "parallel"),
            vmem_limit_bytes=_vmem_limit_bytes(),
        ),
        cost_estimate=pl.CostEstimate(flops=flops, transcendentals=0,
                                      bytes_accessed=bytes_accessed),
    )(xr, xi, wr, wi)


# ----------------------------------------------------------------------------
# One FFNO spectral conv along a single spatial axis (axis in {2, 3, 4}).
# ----------------------------------------------------------------------------
def _spectral_conv(x, w_r, w_i, axis, compute_dtype=jnp.bfloat16, out_dtype=None):
    """x: real [B, Ci, S0, S1, S2]; weight real/imag: [Ci, Co, M]."""
    out_dtype = compute_dtype if out_dtype is None else out_dtype
    x = x.astype(jnp.float32)
    N = x.shape[axis]
    x_ft = jnp.fft.rfft(x, axis=axis, norm="ortho")
    Nf = x_ft.shape[axis]
    M = w_r.shape[2]
    assert M <= Nf, "n_modes must not exceed rfft length"
    x_ft = lax.slice_in_dim(x_ft, 0, M, axis=axis)

    others = [a for a in (2, 3, 4) if a != axis]
    perm = (axis, 1, 0, others[0], others[1])
    # real/imag + cast first, transpose/reshape after: XLA fuses this into a pass
    # that reads the complex spectrum once and writes the compute_dtype slabs once.
    xr = jnp.transpose(jnp.real(x_ft).astype(compute_dtype), perm)
    xi = jnp.transpose(jnp.imag(x_ft).astype(compute_dtype), perm)
    _, Ci, B, O1, O2 = xr.shape
    S = B * O1 * O2
    xr = xr.reshape(M, Ci, S)
    xi = xi.reshape(M, Ci, S)

    Co = w_r.shape[1]
    wr = jnp.transpose(w_r, (2, 1, 0)).astype(compute_dtype)   # [M, Co, Ci]
    wi = jnp.transpose(w_i, (2, 1, 0)).astype(compute_dtype)

    in_b = jnp.dtype(compute_dtype).itemsize
    out_b = jnp.dtype(out_dtype).itemsize
    G, M_pad, s_tile, _, S_pad = _plan_tiles(M, Ci, Co, S, in_b, out_b)

    if (M_pad != M) or (S_pad != S):
        cfg = ((0, M_pad - M), (0, 0), (0, S_pad - S))
        xr = jnp.pad(xr, cfg)
        xi = jnp.pad(xi, cfg)
    if M_pad != M:
        wcfg = ((0, M_pad - M), (0, 0), (0, 0))
        wr = jnp.pad(wr, wcfg)
        wi = jnp.pad(wi, wcfg)

    o_r, o_i = _complex_mix(xr, xi, wr, wi, G, s_tile, out_dtype)

    o_r = o_r[:M, :, :S].reshape(M, Co, B, O1, O2)
    o_i = o_i[:M, :, :S].reshape(M, Co, B, O1, O2)
    cur = [axis, 1, 0, others[0], others[1]]
    inv_perm = [cur.index(i) for i in range(5)]
    o_r = jnp.transpose(o_r, inv_perm).astype(jnp.float32)
    o_i = jnp.transpose(o_i, inv_perm).astype(jnp.float32)
    pad5 = [(0, 0)] * 5
    pad5[axis] = (0, Nf - M)
    out_ft = lax.complex(jnp.pad(o_r, pad5), jnp.pad(o_i, pad5))
    return jnp.fft.irfft(out_ft, n=N, axis=axis, norm="ortho")


# ----------------------------------------------------------------------------
# Full FFNOConv3d forward.
# ----------------------------------------------------------------------------
def ffno_conv3d_forward(x, w1, w2, w3, compute_dtype=jnp.bfloat16, out_dtype=None):
    """x: [B, C, T, X, Y]; w1/w2/w3 are (real, imag) tuples of shape [Ci, Co, M].

    Set compute_dtype=jnp.float32 (and/or out_dtype=jnp.float32) for a full-f32
    path if bf16 spectral quantization is a concern across stacked layers.
    """
    C = x.shape[1]
    # Stricter than torch.chunk(3): the PyTorch module's weight shapes only match
    # the chunk sizes when C % 3 == 0 anyway.
    assert C % 3 == 0, "in_channels must be divisible by 3"
    c = C // 3
    xx = x[:, c:2 * c]
    xy = x[:, 2 * c:]
    # NOTE: the first chunk (xt) is unused — the PyTorch forward feeds `xx` into
    # BOTH the T-axis and X-axis branches and discards the original xt chunk.
    o_t = _spectral_conv(xx, w1[0], w1[1], axis=2,
                         compute_dtype=compute_dtype, out_dtype=out_dtype)
    o_x = _spectral_conv(xx, w2[0], w2[1], axis=3,
                         compute_dtype=compute_dtype, out_dtype=out_dtype)
    o_y = _spectral_conv(xy, w3[0], w3[1], axis=4,
                         compute_dtype=compute_dtype, out_dtype=out_dtype)
    return jnp.concatenate([o_t, o_x, o_y], axis=1)


# ----------------------------------------------------------------------------
# Pure-JAX reference (mirrors the torch code) for a correctness check.
# ----------------------------------------------------------------------------
def _reference_forward(x, w1c, w2c, w3c):
    def spec(xc, w, axis, eq):
        x_ft = jnp.fft.rfft(xc.astype(jnp.float32), axis=axis, norm="ortho")
        M = w.shape[2]
        Nf = x_ft.shape[axis]
        sl = [slice(None)] * 5
        sl[axis] = slice(0, M)
        part = jnp.einsum(eq, x_ft[tuple(sl)], w)
        pad = [(0, 0)] * 5
        pad[axis] = (0, Nf - M)
        out_ft = jnp.pad(part, pad)
        return jnp.fft.irfft(out_ft, n=xc.shape[axis], axis=axis, norm="ortho")

    c = x.shape[1] // 3
    xx = x[:, c:2 * c]
    xy = x[:, 2 * c:]
    o1 = spec(xx, w1c, 2, "bitxy,iot->botxy")
    o2 = spec(xx, w2c, 3, "bitxy,iox->botxy")
    o3 = spec(xy, w3c, 4, "bitxy,ioy->botxy")
    return jnp.concatenate([o1, o2, o3], axis=1)


if __name__ == "__main__":
    key = jax.random.PRNGKey(0)
    B = 2
    in_channels = out_channels = 12
    T, X, Y = 16, 16, 16
    n_modes = (6, 6, 6)

    ci = in_channels // 3
    co = out_channels // 3
    ci3 = in_channels - 2 * ci
    co3 = out_channels - 2 * co

    k1, k2, k3, kx = jax.random.split(key, 4)

    def kaiming_real(k, shape):
        # mimics nn.init.kaiming_normal_ on the real part (imag stays zero)
        fan_in = shape[1] * shape[2]
        return jax.random.normal(k, shape, jnp.float32) * jnp.sqrt(2.0 / fan_in)

    w1r = kaiming_real(k1, (ci, co, n_modes[0]));   w1i = jnp.zeros_like(w1r)
    w2r = kaiming_real(k2, (ci, co, n_modes[1]));   w2i = jnp.zeros_like(w2r)
    w3r = kaiming_real(k3, (ci3, co3, n_modes[2])); w3i = jnp.zeros_like(w3r)

    x = jax.random.normal(kx, (B, in_channels, T, X, Y), jnp.float32)

    fwd = jax.jit(ffno_conv3d_forward)
    out = fwd(x, (w1r, w1i), (w2r, w2i), (w3r, w3i))
    out = jax.block_until_ready(out)
    assert out.shape == (B, out_channels, T, X, Y)
    assert out.dtype == jnp.float32

    ref = _reference_forward(x, w1r + 1j * w1i, w2r + 1j * w2i, w3r + 1j * w3i)
    ref = jax.block_until_ready(ref)
    np.testing.assert_allclose(np.asarray(out), np.asarray(ref), rtol=2e-2, atol=2e-2)

    print("KERNEL_OK")
</pallas_src>

<mosaic_0001>
module attributes {stable_mosaic.version = 11 : i64} {
  func.func @_mix_kernel(%arg0: i32, %arg1: i32, %arg2: memref<1x4x512xbf16, #tpu.memory_space<vmem>>, %arg3: memref<1x4x512xbf16, #tpu.memory_space<vmem>>, %arg4: memref<6x4x4xbf16, #tpu.memory_space<vmem>>, %arg5: memref<6x4x4xbf16, #tpu.memory_space<vmem>>, %arg6: memref<1x4x512xbf16, #tpu.memory_space<vmem>>, %arg7: memref<1x4x512xbf16, #tpu.memory_space<vmem>>) attributes {dimension_semantics = [#tpu.dimension_semantics<parallel>, #tpu.dimension_semantics<parallel>], iteration_bounds = array<i64: 6, 1>, scalar_prefetch = 0 : i64, scratch_operands = 0 : i64, tpu.core_type = #tpu.core_type<tc>, window_params = [{transform_indices = @transform_0, window_bounds = array<i64: 1, 4, 512>}, {transform_indices = @transform_1, window_bounds = array<i64: 1, 4, 512>}, {pipeline_mode = #tpu.pipeline_mode<synchronous>, transform_indices = @transform_2, window_bounds = array<i64: 6, 4, 4>}, {pipeline_mode = #tpu.pipeline_mode<synchronous>, transform_indices = @transform_3, window_bounds = array<i64: 6, 4, 4>}, {transform_indices = @transform_4, window_bounds = array<i64: 1, 4, 512>}, {transform_indices = @transform_5, window_bounds = array<i64: 1, 4, 512>}]} {
    %c1_i32 = arith.constant 1 : i32
    %0 = arith.muli %arg0, %c1_i32 : i32
    %c0_i32 = arith.constant 0 : i32
    %1 = arith.addi %0, %c0_i32 : i32
    %2 = arith.index_cast %1 : i32 to index
    %c0 = arith.constant 0 : index
    %c0_0 = arith.constant 0 : index
    %3 = vector.load %arg4[%2, %c0, %c0_0] : memref<6x4x4xbf16, #tpu.memory_space<vmem>>, vector<1x4x4xbf16>
    %4 = vector.shape_cast %3 : vector<1x4x4xbf16> to vector<4x4xbf16>
    %5 = arith.index_cast %1 : i32 to index
    %c0_1 = arith.constant 0 : index
    %c0_2 = arith.constant 0 : index
    %6 = vector.load %arg5[%5, %c0_1, %c0_2] : memref<6x4x4xbf16, #tpu.memory_space<vmem>>, vector<1x4x4xbf16>
    %7 = vector.shape_cast %6 : vector<1x4x4xbf16> to vector<4x4xbf16>
    %c0_3 = arith.constant 0 : index
    %c0_4 = arith.constant 0 : index
    %c0_5 = arith.constant 0 : index
    %8 = vector.load %arg2[%c0_3, %c0_4, %c0_5] : memref<1x4x512xbf16, #tpu.memory_space<vmem>>, vector<1x4x512xbf16>
    %9 = vector.shape_cast %8 : vector<1x4x512xbf16> to vector<4x512xbf16>
    %c0_6 = arith.constant 0 : index
    %c0_7 = arith.constant 0 : index
    %c0_8 = arith.constant 0 : index
    %10 = vector.load %arg3[%c0_6, %c0_7, %c0_8] : memref<1x4x512xbf16, #tpu.memory_space<vmem>>, vector<1x4x512xbf16>
    %11 = vector.shape_cast %10 : vector<1x4x512xbf16> to vector<4x512xbf16>
    %cst = arith.constant dense<0.000000e+00> : vector<4x512xf32>
    %12 = tpu.matmul %4, %9, %cst {dimension_numbers = #tpu.dot_dimension_numbers<[1], [0], [0], [1], [0, 0, 1, 1], [], []>} : vector<4x4xbf16>, vector<4x512xbf16>, vector<4x512xf32> -> vector<4x512xf32>
    %cst_9 = arith.constant dense<0.000000e+00> : vector<4x512xf32>
    %13 = tpu.matmul %7, %11, %cst_9 {dimension_numbers = #tpu.dot_dimension_numbers<[1], [0], [0], [1], [0, 0, 1, 1], [], []>} : vector<4x4xbf16>, vector<4x512xbf16>, vector<4x512xf32> -> vector<4x512xf32>
    %14 = arith.subf %12, %13 : vector<4x512xf32>
    %cst_10 = arith.constant dense<0.000000e+00> : vector<4x512xf32>
    %15 = tpu.matmul %7, %9, %cst_10 {dimension_numbers = #tpu.dot_dimension_numbers<[1], [0], [0], [1], [0, 0, 1, 1], [], []>} : vector<4x4xbf16>, vector<4x512xbf16>, vector<4x512xf32> -> vector<4x512xf32>
    %cst_11 = arith.constant dense<0.000000e+00> : vector<4x512xf32>
    %16 = tpu.matmul %4, %11, %cst_11 {dimension_numbers = #tpu.dot_dimension_numbers<[1], [0], [0], [1], [0, 0, 1, 1], [], []>} : vector<4x4xbf16>, vector<4x512xbf16>, vector<4x512xf32> -> vector<4x512xf32>
    %17 = arith.addf %15, %16 : vector<4x512xf32>
    %18 = arith.truncf %14 : vector<4x512xf32> to vector<4x512xbf16>
    %c0_12 = arith.constant 0 : index
    %c0_13 = arith.constant 0 : index
    %c0_14 = arith.constant 0 : index
    %19 = vector.load %arg6[%c0_12, %c0_13, %c0_14] : memref<1x4x512xbf16, #tpu.memory_space<vmem>>, vector<1x4x512xbf16>
    %20 = vector.shape_cast %19 : vector<1x4x512xbf16> to vector<4x512xbf16>
    %21 = vector.shape_cast %18 : vector<4x512xbf16> to vector<1x4x512xbf16>
    tpu.vector_store %arg6[%c0_12, %c0_13, %c0_14], %21 {strides = array<i32>} : memref<1x4x512xbf16, #tpu.memory_space<vmem>>, vector<1x4x512xbf16>,
    %22 = arith.truncf %17 : vector<4x512xf32> to vector<4x512xbf16>
    %c0_15 = arith.constant 0 : index
    %c0_16 = arith.constant 0 : index
    %c0_17 = arith.constant 0 : index
    %23 = vector.load %arg7[%c0_15, %c0_16, %c0_17] : memref<1x4x512xbf16, #tpu.memory_space<vmem>>, vector<1x4x512xbf16>
    %24 = vector.shape_cast %23 : vector<1x4x512xbf16> to vector<4x512xbf16>
    %25 = vector.shape_cast %22 : vector<4x512xbf16> to vector<1x4x512xbf16>
    tpu.vector_store %arg7[%c0_15, %c0_16, %c0_17], %25 {strides = array<i32>} : memref<1x4x512xbf16, #tpu.memory_space<vmem>>, vector<1x4x512xbf16>,
    return
  }
  func.func @transform_0(%arg0: i32, %arg1: i32) -> (i32, i32, i32) {
    %c0_i32 = arith.constant 0 : i32
    %c0_i32_0 = arith.constant 0 : i32
    return %arg0, %c0_i32, %arg1 : i32, i32, i32
  }
  func.func @transform_1(%arg0: i32, %arg1: i32) -> (i32, i32, i32) {
    %c0_i32 = arith.constant 0 : i32
    %c0_i32_0 = arith.constant 0 : i32
    return %arg0, %c0_i32, %arg1 : i32, i32, i32
  }
  func.func @transform_2(%arg0: i32, %arg1: i32) -> (i32, i32, i32) {
    %c0_i32 = arith.constant 0 : i32
    %c0_i32_0 = arith.constant 0 : i32
    %c0_i32_1 = arith.constant 0 : i32
    %c0_i32_2 = arith.constant 0 : i32
    return %c0_i32, %c0_i32_0, %c0_i32_1 : i32, i32, i32
  }
  func.func @transform_3(%arg0: i32, %arg1: i32) -> (i32, i32, i32) {
    %c0_i32 = arith.constant 0 : i32
    %c0_i32_0 = arith.constant 0 : i32
    %c0_i32_1 = arith.constant 0 : i32
    %c0_i32_2 = arith.constant 0 : i32
    return %c0_i32, %c0_i32_0, %c0_i32_1 : i32, i32, i32
  }
  func.func @transform_4(%arg0: i32, %arg1: i32) -> (i32, i32, i32) {
    %c0_i32 = arith.constant 0 : i32
    %c0_i32_0 = arith.constant 0 : i32
    return %arg0, %c0_i32, %arg1 : i32, i32, i32
  }
  func.func @transform_5(%arg0: i32, %arg1: i32) -> (i32, i32, i32) {
    %c0_i32 = arith.constant 0 : i32
    %c0_i32_0 = arith.constant 0 : i32
    return %arg0, %c0_i32, %arg1 : i32, i32, i32
  }
}

</mosaic_0001>

<bundles_post_ra>
// kernel: ffno_conv3d_forward.3
= control target key start
LH: loop header
LB: loop body
LE: loop exit
PB: predicated region body
PF: predicated region fallthrough
CT: control target
= control target key end

     0   :  { %s915_s18 = smov 0   ;;  %s917_s19 = smov 0   ;;  %s1013_s0 = inlined_call_operand.vmem [shape: bf16[6,4,512], index: 0, kind: input, shape index: {}]   ;;  %s1014_s1 = inlined_call_operand.vmem [shape: bf16[6,4,512], index: 1, kind: input, shape index: {}]   ;;  %s1015_s2 = inlined_call_operand.vmem [shape: bf16[6,4,4], index: 2, kind: input, shape index: {}]   ;;  %s1016_s3 = inlined_call_operand.vmem [shape: bf16[6,4,4], index: 3, kind: input, shape index: {}]   ;;  %s1017_s4 = inlined_call_operand.vmem [shape: bf16[6,4,512], index: 4, kind: output, shape index: {0}]   ;;  %s1018_s5 = inlined_call_operand.vmem [shape: bf16[6,4,512], index: 5, kind: output, shape index: {1}]  }
   0x1   :  { %s919_s20 = smov 0  }
   0x2 LB: > { %s28_s21 = sadd.s32 1, %s879_s19  ;;  %p804_p0 = scmp.ge.s32.totalorder %s883_s20, 1  ;;  %s883_s20 = sphi %s919_s20, %s16_s20   ;;  %s879_s19 = sphi %s917_s19, %s1020_s19   ;;  %s875_s18 = sphi %s915_s18, %s1019_s18  }
   0x3   : > { %p30_p1 = scmp.ge.s32.totalorder %s28_s21, 6  ;;  %p230_p2 = scmp.lt.s32.totalorder %s883_s20, 7 }
   0x5   : > { %s1022_s21 = smov (%p30_p1, %s28_s21), 0  ;;  %p231_p3 = pnand %p804_p0, %p230_p2 }
   0x6   : > { %p285_p4 = scmp.lt.s32.totalorder (!%p231_p3), %s875_s18, 5  ;;  %s813_s30 = sshll.u32 (!%p231_p3), %s875_s18, 1 }
   0x7   : > { %234 = sbr.rel (%p231_p3) target bundleno = 220 (0xdc), region = 36  ;;  %s326_s8 = scalar_lea.vmem (!%p231_p3), %s1015_s2, %s813_s30 }
   0x8   : > { %s329_s11 = scalar_lea.vmem (!%p231_p3), %s1016_s3, %s813_s30 }
   0xc   : > { %s286_s22 = scalar_select %p285_p4, %s875_s18, 5  ;;  %vm343_vm0 = vcmask 1041408   ;;  %vm339_vm1 = vcmask 31744   ;;  %v327_v9 = vld [vmem:[%s326_s8] sm:$0x3]  ;;  %vm617_vm2 = vcmask 1045508  }
   0xd   : > { %v330_v19 = vld [vmem:[%s329_s11] sm:$0x3]  ;;  %vm621_vm3 = vcmask 1043456  }
   0xe   : > { %s937_s23 = sshll.u32 %s286_s22, 3 }
   0xf   : > { %s292_s26 = scalar_lea.vmem %s1013_s0, %s937_s23  ;;  %s302_s29 = scalar_lea.vmem %s1014_s1, %s937_s23 }
  0x10   : > { %v331_v0 = vld [vmem:[%s292_s26] sm:$0xff]  ;;  %s312_s14 = scalar_lea.vmem %s1017_s4, %s937_s23  ;;  %s322_s17 = scalar_lea.vmem %s1018_s5, %s937_s23 }
  0x11   : > { %334 = vst [vmem:[#allocation1] ss:$4 sm:$0xff] %v331_v0  ;;  %v332_v1 = vld [vmem:[%s302_s29] sm:$0xff] }
  0x18   : > { %v335_v2 = vld.sshfl [vmem:[#allocation1] sm:$0xff pattern:$0x73625140]  ;;  %v336_v3 = vld.sshfl [vmem:[#allocation1 + $0x8] sm:$0xff pattern:$0x73625140] }
  0x19   : > { %v344_v4 = vsel %vm343_vm0, %v335_v2, 0  ;;  %v346_v5 = vsel %vm343_vm0, %v336_v3, 0  ;;  %v337_v6 = vld.sshfl [vmem:[#allocation1 + $0x10] sm:$0xff pattern:$0x73625140] }
  0x1a   : > { %359 = vmatpush.bf16.msra.mxu0 %v344_v4  ;;  %372 = vmatpush.bf16.msra.mxu1 %v346_v5  ;;  %v348_v7 = vsel %vm343_vm0, %v337_v6, 0  ;;  %v338_v8 = vld.sshfl [vmem:[#allocation1 + $0x18] sm:$0xff pattern:$0x73625140] }
  0x1b   : > { %385 = vmatpush.bf16.msra.mxu2 %v348_v7  ;;  %v350_v10 = vsel %vm343_vm0, %v338_v8, 0  ;;  %405 = vst [vmem:[#allocation1] ss:$4 sm:$0xff] %v332_v1 }
  0x1c   : > { %398 = vmatpush.bf16.msra.mxu3 %v350_v10 }
  0x1d   : > { %815 = vmatmul.msk.bf16.vlgmr.msra.gmra.mxu0 %vm339_vm1, %v327_v9  ;;  %816 = vmatmul.msk.bf16.vlgmr.msra.gmra.mxu1 %vm339_vm1, %v327_v9 }
  0x1e   : > { %817 = vmatmul.msk.bf16.vlgmr.msra.gmra.mxu2 %vm339_vm1, %v327_v9 }
  0x1f   : > { %818 = vmatmul.msk.bf16.vlgmr.msra.gmra.mxu3 %vm339_vm1, %v327_v9 }
  0x22   : > { %v408_v11 = vld.sshfl [vmem:[#allocation1 + $0x10] sm:$0xff pattern:$0x73625140]  ;;  %v409_v12 = vld.sshfl [vmem:[#allocation1 + $0x18] sm:$0xff pattern:$0x73625140] }
  0x23   : > { %v417_v13 = vsel %vm343_vm0, %v408_v11, 0  ;;  %v419_v14 = vsel %vm343_vm0, %v409_v12, 0  ;;  %v406_v15 = vld.sshfl [vmem:[#allocation1] sm:$0xff pattern:$0x73625140] }
  0x24   : > { %454 = vmatpush.bf16.msrb.mxu2 %v417_v13  ;;  %467 = vmatpush.bf16.msrb.mxu3 %v419_v14  ;;  %v413_v16 = vsel %vm343_vm0, %v406_v15, 0  ;;  %v407_v17 = vld.sshfl [vmem:[#allocation1 + $0x8] sm:$0xff pattern:$0x73625140] }
  0x25   : > { %428 = vmatpush.bf16.msrb.mxu0 %v413_v16  ;;  %v415_v18 = vsel %vm343_vm0, %v407_v17, 0  ;;  %477 = vst [vmem:[#allocation1] ss:$4 sm:$0xff] %v332_v1 }
  0x26   : > { %441 = vmatpush.bf16.msrb.mxu1 %v415_v18 }
  0x2c   : > { %v480_v20 = vld.sshfl [vmem:[#allocation1 + $0x10] sm:$0xff pattern:$0x73625140]  ;;  %v481_v21 = vld.sshfl [vmem:[#allocation1 + $0x18] sm:$0xff pattern:$0x73625140] }
  0x2d   : > { %819 = vmatmul.msk.bf16.vlgmr.msrb.gmra.mxu0 %vm339_vm1, %v330_v19  ;;  %820 = vmatmul.msk.bf16.vlgmr.msrb.gmra.mxu1 %vm339_vm1, %v330_v19  ;;  %v486_v22 = vsel %vm343_vm0, %v480_v20, 0  ;;  %v488_v23 = vsel %vm343_vm0, %v481_v21, 0  ;;  %v478_v24 = vld.sshfl [vmem:[#allocation1] sm:$0xff pattern:$0x73625140] }
  0x2e   : > { %821 = vmatmul.msk.bf16.vlgmr.msrb.gmra.mxu2 %vm339_vm1, %v330_v19  ;;  %536 = vmatpush.bf16.msra.mxu3 %v488_v23  ;;  %v482_v25 = vsel %vm343_vm0, %v478_v24, 0  ;;  %v479_v26 = vld.sshfl [vmem:[#allocation1 + $0x8] sm:$0xff pattern:$0x73625140] }
  0x2f   : > { %822 = vmatmul.msk.bf16.vlgmr.msrb.gmra.mxu3 %vm339_vm1, %v330_v19  ;;  %523 = vmatpush.bf16.msra.mxu2 %v486_v22  ;;  %v484_v27 = vsel %vm343_vm0, %v479_v26, 0  ;;  %542 = vst [vmem:[#allocation1] ss:$4 sm:$0xff] %v331_v0 }
  0x30   : > { %497 = vmatpush.bf16.msra.mxu0 %v482_v25  ;;  %510 = vmatpush.bf16.msra.mxu1 %v484_v27 }
  0x36   : > { %v545_v28 = vld.sshfl [vmem:[#allocation1 + $0x10] sm:$0xff pattern:$0x73625140]  ;;  %v546_v29 = vld.sshfl [vmem:[#allocation1 + $0x18] sm:$0xff pattern:$0x73625140] }
  0x37   : > { %v551_v30 = vsel %vm343_vm0, %v545_v28, 0  ;;  %v553_v31 = vsel %vm343_vm0, %v546_v29, 0  ;;  %v543_v32 = vld.sshfl [vmem:[#allocation1] sm:$0xff pattern:$0x73625140] }
  0x38   : > { %588 = vmatpush.bf16.msrb.mxu2 %v551_v30  ;;  %601 = vmatpush.bf16.msrb.mxu3 %v553_v31  ;;  %v547_v33 = vsel %vm343_vm0, %v543_v32, 0  ;;  %v544_v34 = vld.sshfl [vmem:[#allocation1 + $0x8] sm:$0xff pattern:$0x73625140] }
  0x39   : > { %562 = vmatpush.bf16.msrb.mxu0 %v547_v33  ;;  %v549_v35 = vsel %vm343_vm0, %v544_v34, 0 }
  0x3a   : > { %575 = vmatpush.bf16.msrb.mxu1 %v549_v35 }
  0x3d   : > { %823 = vmatmul.msk.bf16.vlgmr.msra.gmra.mxu0 %vm339_vm1, %v327_v9  ;;  %824 = vmatmul.msk.bf16.vlgmr.msra.gmra.mxu1 %vm339_vm1, %v327_v9 }
  0x3e   : > { %825 = vmatmul.msk.bf16.vlgmr.msra.gmra.mxu2 %vm339_vm1, %v327_v9 }
  0x3f   : > { %826 = vmatmul.msk.bf16.vlgmr.msra.gmra.mxu3 %vm339_vm1, %v327_v9 }
  0x4d   : > { %827 = vmatmul.msk.bf16.vlgmr.msrb.gmra.mxu0 %vm339_vm1, %v330_v19  ;;  %828 = vmatmul.msk.bf16.vlgmr.msrb.gmra.mxu1 %vm339_vm1, %v330_v19 }
  0x4e   : > { %829 = vmatmul.msk.bf16.vlgmr.msrb.gmra.mxu2 %vm339_vm1, %v330_v19 }
  0x4f   : > { %830 = vmatmul.msk.bf16.vlgmr.msrb.gmra.mxu3 %vm339_vm1, %v330_v19 }
  0x9a   : > { %v361_v36 = vpop.f32.mrf.mxu0  ;;  %v374_v37 = vpop.f32.mrf.mxu1 }
  0xa1   : > { %v387_v38 = vpop.f32.mrf.mxu2 }
  0xa2   : > { %v400_v39 = vpop.f32.mrf.mxu3  ;;  %v363_v40 = vpop.f32.mrf.mxu0 }
  0xa3   : > { %v376_v41 = vpop.f32.mrf.mxu1 }
  0xa9   : > { %v389_v42 = vpop.f32.mrf.mxu2 }
  0xaa   : > { %v402_v43 = vpop.f32.mrf.mxu3  ;;  %v430_v44 = vpop.f32.mrf.mxu0 }
  0xab   : > { %v443_v45 = vpop.f32.mrf.mxu1  ;;  %v473_v46 = vsub.f32 %v361_v36, %v430_v44 }
  0xac   : > { %v474_v47 = vsub.f32 %v374_v37, %v443_v45 }
  0xae   : > { %v607_v48 = vpack.c.bf16 %v474_v47, %v473_v46 }
  0xb0   : > { %v611_v55 = vrot.slane %v607_v48, 2 }
  0xb1   : > { %v456_v49 = vpop.f32.mrf.mxu2 }
  0xb2   : > { %v475_v50 = vsub.f32 %v387_v38, %v456_v49  ;;  %v469_v51 = vpop.f32.mrf.mxu3  ;;  %v432_v52 = vpop.f32.mrf.mxu0  ;;  %v616_v59 = vsel %vm343_vm0, %v607_v48, %v611_v55 }
  0xb3   : > { %v476_v53 = vsub.f32 %v400_v39, %v469_v51  ;;  %v445_v54 = vpop.f32.mrf.mxu1 }
  0xb5   : > { %v608_v56 = vpack.c.bf16 %v476_v53, %v475_v50 }
  0xb7   : > { %v612_v57 = vrot.slane %v608_v56, 4  ;;  %v613_v58 = vrot.slane %v608_v56, 6 }
  0xb9   : > { %v620_v60 = vsel %vm617_vm2, %v612_v57, %v613_v58  ;;  %v458_v61 = vpop.f32.mrf.mxu2 }
  0xba   : > { %v622_v62 = vsel %vm621_vm3, %v616_v59, %v620_v60  ;;  %v471_v63 = vpop.f32.mrf.mxu3  ;;  %v499_v0 = vpop.f32.mrf.mxu0 }
  0xbb   : > { %624 = vst [vmem:[%s312_s14] sm:$0xff] %v622_v62  ;;  %v512_v1 = vpop.f32.mrf.mxu1 }
  0xc1   : > { %v525_v2 = vpop.f32.mrf.mxu2 }
  0xc2   : > { %v538_v3 = vpop.f32.mrf.mxu3  ;;  %v501_v4 = vpop.f32.mrf.mxu0 }
  0xc3   : > { %v514_v5 = vpop.f32.mrf.mxu1 }
  0xc9   : > { %v527_v6 = vpop.f32.mrf.mxu2 }
  0xca   : > { %v540_v7 = vpop.f32.mrf.mxu3  ;;  %v564_v8 = vpop.f32.mrf.mxu0 }
  0xcb   : > { %v577_v9 = vpop.f32.mrf.mxu1  ;;  %v565_v10 = vadd.f32 %v564_v8, %v499_v0 }
  0xcc   : > { %v578_v11 = vadd.f32 %v577_v9, %v512_v1 }
  0xce   : > { %v625_v12 = vpack.c.bf16 %v578_v11, %v565_v10 }
  0xd0   : > { %v629_v19 = vrot.slane %v625_v12, 2 }
  0xd1   : > { %v590_v13 = vpop.f32.mrf.mxu2 }
  0xd2   : > { %v591_v14 = vadd.f32 %v590_v13, %v525_v2  ;;  %v603_v15 = vpop.f32.mrf.mxu3  ;;  %v566_v16 = vpop.f32.mrf.mxu0  ;;  %v634_v23 = vsel %vm343_vm0, %v625_v12, %v629_v19 }
  0xd3   : > { %v604_v17 = vadd.f32 %v603_v15, %v538_v3  ;;  %v579_v18 = vpop.f32.mrf.mxu1 }
  0xd5   : > { %v626_v20 = vpack.c.bf16 %v604_v17, %v591_v14 }
  0xd7   : > { %v630_v21 = vrot.slane %v626_v20, 4  ;;  %v631_v22 = vrot.slane %v626_v20, 6 }
  0xd9   : > { %v637_v24 = vsel %vm617_vm2, %v630_v21, %v631_v22  ;;  %v592_v25 = vpop.f32.mrf.mxu2 }
  0xda   : > { %v638_v26 = vsel %vm621_vm3, %v634_v23, %v637_v24  ;;  %v605_v27 = vpop.f32.mrf.mxu3 }
  0xdb   : > { %640 = vst [vmem:[%s322_s17] sm:$0xff] %v638_v26 }
  0xdc PF: > { %s16_s20 = sadd.s32 1, %s883_s20   ;;  %s1019_s18 = smov %s879_s19 }
  0xdd   : > { %p13_p5 = scmp.ge.s32.totalorder %s16_s20, 8   ;;  %s1020_s19 = smov %s1022_s21 }
  0xdf   :  { %15 = sbr.rel (!%p13_p5) target bundleno = 2 (0x2), region = 83 }

// kernel: reverse.7
= control target key start
LH: loop header
LB: loop body
LE: loop exit
PB: predicated region body
PF: predicated region fallthrough
CT: control target
= control target key end

     0   :  { %v2_v0 = vlaneseq  ;;  %s3068_s0 = inlined_call_operand.vmem [shape: f32[2,4,16,16,7], index: 0, kind: input, shape index: {}]   ;;  %s3069_s1 = inlined_call_operand.vmem [shape: f32[2,4,16,16,7], index: 1, kind: output, shape index: {}]  }
   0x2   :  { %v2501_v1 = vsub.s32 6, %v2_v0 }
   0x4   :  { %4 = vset.pattern.permute.xlu0 %v2501_v1 }
   0x5   :  { %s2504_s6 = smov 0   ;;  %s2506_s7 = smov 0  }
   0x6   :  { %s2508_s8 = smov 0  }
   0x7 LB: > { %s2167_s9 = sadd.s32 4294967295, %s2489_s8   ;;  %s35_s10 = sadd.s32 1, %s2485_s7  ;;  %s2489_s8 = sphi %s2508_s8, %s10_s8   ;;  %s2485_s7 = sphi %s2506_s7, %s3071_s7   ;;  %s2481_s6 = sphi %s2504_s6, %s3070_s6  }
   0x8   : > { %p37_p0 = scmp.ge.s32.totalorder %s35_s10, 2  ;;  %p2169_p1 = scmp.ge.s32.totalorder %s2489_s8, 2 }
   0x9   : > { %s59_s11 = sand.u32 (!%p2169_p1), 1, %s2489_s8   ;;  %s2438_s12 = sshll.u32 (!%p2169_p1), %s2485_s7, 7 }
   0xa   : > { %s3073_s10 = smov (%p37_p0, %s35_s10), 0  ;;  %57 = sbr.rel (%p2169_p1) target bundleno = 144 (0x90), region = 16 }
   0xb   : > { %s2170_s13 = sshll.u32 (!%p2169_p1), %s59_s11, 10  ;;  %s2529_s16 = scalar_lea.vmem (!%p2169_p1), %s3068_s0, %s2438_s12 }
   0xc   : > { %s2534_s17 = scalar_lea.vmem (!%p2169_p1), [#allocation0], %s2170_s13 }
   0xf   : > { %v358_v2 = vld [vmem:[%s2529_s16] sm:$0xff]  ;;  %v360_v3 = vld [vmem:[%s2529_s16 + $0x8] sm:$0xff]  ;;  %v362_v4 = vld [vmem:[%s2529_s16 + $0x10] sm:$0xff] }
  0x10   : > { %359 = vst [vmem:[%s2534_s17] sm:$0xff] %v358_v2  ;;  %v364_v5 = vld [vmem:[%s2529_s16 + $0x18] sm:$0xff]  ;;  %v366_v6 = vld [vmem:[%s2529_s16 + $0x20] sm:$0xff]  ;;  %v368_v7 = vld [vmem:[%s2529_s16 + $0x28] sm:$0xff] }
  0x11   : > { %361 = vst [vmem:[%s2534_s17 + $0x8] sm:$0xff] %v360_v3  ;;  %v370_v8 = vld [vmem:[%s2529_s16 + $0x30] sm:$0xff]  ;;  %v372_v9 = vld [vmem:[%s2529_s16 + $0x38] sm:$0xff]  ;;  %v374_v10 = vld [vmem:[%s2529_s16 + $0x40] sm:$0xff] }
  0x12   : > { %363 = vst [vmem:[%s2534_s17 + $0x10] sm:$0xff] %v362_v4  ;;  %v376_v11 = vld [vmem:[%s2529_s16 + $0x48] sm:$0xff]  ;;  %v378_v12 = vld [vmem:[%s2529_s16 + $0x50] sm:$0xff]  ;;  %v380_v13 = vld [vmem:[%s2529_s16 + $0x58] sm:$0xff] }
  0x13   : > { %365 = vst [vmem:[%s2534_s17 + $0x18] sm:$0xff] %v364_v5  ;;  %v382_v14 = vld [vmem:[%s2529_s16 + $0x60] sm:$0xff]  ;;  %v384_v15 = vld [vmem:[%s2529_s16 + $0x68] sm:$0xff]  ;;  %v386_v16 = vld [vmem:[%s2529_s16 + $0x70] sm:$0xff] }
  0x14   : > { %367 = vst [vmem:[%s2534_s17 + $0x20] sm:$0xff] %v366_v6  ;;  %v388_v17 = vld [vmem:[%s2529_s16 + $0x78] sm:$0xff]  ;;  %v390_v18 = vld [vmem:[%s2529_s16 + $0x100] sm:$0xff]  ;;  %v392_v19 = vld [vmem:[%s2529_s16 + $0x108] sm:$0xff] }
  0x15   : > { %369 = vst [vmem:[%s2534_s17 + $0x28] sm:$0xff] %v368_v7  ;;  %v394_v20 = vld [vmem:[%s2529_s16 + $0x110] sm:$0xff]  ;;  %v396_v21 = vld [vmem:[%s2529_s16 + $0x118] sm:$0xff]  ;;  %v398_v22 = vld [vmem:[%s2529_s16 + $0x120] sm:$0xff] }
  0x16   : > { %371 = vst [vmem:[%s2534_s17 + $0x30] sm:$0xff] %v370_v8  ;;  %v400_v23 = vld [vmem:[%s2529_s16 + $0x128] sm:$0xff]  ;;  %v402_v24 = vld [vmem:[%s2529_s16 + $0x130] sm:$0xff]  ;;  %v404_v25 = vld [vmem:[%s2529_s16 + $0x138] sm:$0xff] }
  0x17   : > { %373 = vst [vmem:[%s2534_s17 + $0x38] sm:$0xff] %v372_v9  ;;  %v406_v26 = vld [vmem:[%s2529_s16 + $0x140] sm:$0xff]  ;;  %v408_v27 = vld [vmem:[%s2529_s16 + $0x148] sm:$0xff]  ;;  %v410_v28 = vld [vmem:[%s2529_s16 + $0x150] sm:$0xff] }
  0x18   : > { %375 = vst [vmem:[%s2534_s17 + $0x40] sm:$0xff] %v374_v10  ;;  %v412_v29 = vld [vmem:[%s2529_s16 + $0x158] sm:$0xff]  ;;  %v414_v30 = vld [vmem:[%s2529_s16 + $0x160] sm:$0xff]  ;;  %v416_v31 = vld [vmem:[%s2529_s16 + $0x168] sm:$0xff] }
  0x19   : > { %377 = vst [vmem:[%s2534_s17 + $0x48] sm:$0xff] %v376_v11  ;;  %v418_v32 = vld [vmem:[%s2529_s16 + $0x170] sm:$0xff]  ;;  %v420_v33 = vld [vmem:[%s2529_s16 + $0x178] sm:$0xff]  ;;  %v422_v34 = vld [vmem:[%s2529_s16 + $0x200] sm:$0xff] }
  0x1a   : > { %379 = vst [vmem:[%s2534_s17 + $0x50] sm:$0xff] %v378_v12  ;;  %v424_v35 = vld [vmem:[%s2529_s16 + $0x208] sm:$0xff]  ;;  %v426_v36 = vld [vmem:[%s2529_s16 + $0x210] sm:$0xff]  ;;  %v428_v37 = vld [vmem:[%s2529_s16 + $0x218] sm:$0xff] }
  0x1b   : > { %381 = vst [vmem:[%s2534_s17 + $0x58] sm:$0xff] %v380_v13  ;;  %v430_v38 = vld [vmem:[%s2529_s16 + $0x220] sm:$0xff]  ;;  %v432_v39 = vld [vmem:[%s2529_s16 + $0x228] sm:$0xff]  ;;  %v434_v40 = vld [vmem:[%s2529_s16 + $0x230] sm:$0xff] }
  0x1c   : > { %383 = vst [vmem:[%s2534_s17 + $0x60] sm:$0xff] %v382_v14  ;;  %v436_v41 = vld [vmem:[%s2529_s16 + $0x238] sm:$0xff]  ;;  %v438_v42 = vld [vmem:[%s2529_s16 + $0x240] sm:$0xff]  ;;  %v440_v43 = vld [vmem:[%s2529_s16 + $0x248] sm:$0xff] }
  0x1d   : > { %385 = vst [vmem:[%s2534_s17 + $0x68] sm:$0xff] %v384_v15  ;;  %v442_v44 = vld [vmem:[%s2529_s16 + $0x250] sm:$0xff]  ;;  %v444_v45 = vld [vmem:[%s2529_s16 + $0x258] sm:$0xff]  ;;  %v446_v46 = vld [vmem:[%s2529_s16 + $0x260] sm:$0xff] }
  0x1e   : > { %387 = vst [vmem:[%s2534_s17 + $0x70] sm:$0xff] %v386_v16  ;;  %v448_v47 = vld [vmem:[%s2529_s16 + $0x268] sm:$0xff]  ;;  %v450_v48 = vld [vmem:[%s2529_s16 + $0x270] sm:$0xff]  ;;  %v452_v49 = vld [vmem:[%s2529_s16 + $0x278] sm:$0xff] }
  0x1f   : > { %389 = vst [vmem:[%s2534_s17 + $0x78] sm:$0xff] %v388_v17  ;;  %v454_v50 = vld [vmem:[%s2529_s16 + $0x300] sm:$0xff]  ;;  %v456_v51 = vld [vmem:[%s2529_s16 + $0x308] sm:$0xff]  ;;  %v458_v52 = vld [vmem:[%s2529_s16 + $0x310] sm:$0xff] }
  0x20   : > { %391 = vst [vmem:[%s2534_s17 + $0x80] sm:$0xff] %v390_v18  ;;  %v460_v53 = vld [vmem:[%s2529_s16 + $0x318] sm:$0xff]  ;;  %v462_v54 = vld [vmem:[%s2529_s16 + $0x320] sm:$0xff]  ;;  %v464_v55 = vld [vmem:[%s2529_s16 + $0x328] sm:$0xff] }
  0x21   : > { %393 = vst [vmem:[%s2534_s17 + $0x88] sm:$0xff] %v392_v19  ;;  %v466_v56 = vld [vmem:[%s2529_s16 + $0x330] sm:$0xff]  ;;  %v468_v57 = vld [vmem:[%s2529_s16 + $0x338] sm:$0xff]  ;;  %v470_v58 = vld [vmem:[%s2529_s16 + $0x340] sm:$0xff] }
  0x22   : > { %395 = vst [vmem:[%s2534_s17 + $0x90] sm:$0xff] %v394_v20  ;;  %v472_v59 = vld [vmem:[%s2529_s16 + $0x348] sm:$0xff]  ;;  %v474_v60 = vld [vmem:[%s2529_s16 + $0x350] sm:$0xff]  ;;  %v476_v61 = vld [vmem:[%s2529_s16 + $0x358] sm:$0xff] }
  0x23   : > { %397 = vst [vmem:[%s2534_s17 + $0x98] sm:$0xff] %v396_v21  ;;  %v478_v62 = vld [vmem:[%s2529_s16 + $0x360] sm:$0xff]  ;;  %v480_v63 = vld [vmem:[%s2529_s16 + $0x368] sm:$0xff]  ;;  %v482_v0 = vld [vmem:[%s2529_s16 + $0x370] sm:$0xff] }
  0x24   : > { %399 = vst [vmem:[%s2534_s17 + $0xa0] sm:$0xff] %v398_v22  ;;  %v484_v2 = vld [vmem:[%s2529_s16 + $0x378] sm:$0xff]  ;;  %v486_v3 = vld [vmem:[%s2529_s16 + $0x400] sm:$0xff]  ;;  %v488_v4 = vld [vmem:[%s2529_s16 + $0x408] sm:$0xff] }
  0x25   : > { %401 = vst [vmem:[%s2534_s17 + $0xa8] sm:$0xff] %v400_v23  ;;  %v490_v5 = vld [vmem:[%s2529_s16 + $0x410] sm:$0xff]  ;;  %v492_v6 = vld [vmem:[%s2529_s16 + $0x418] sm:$0xff]  ;;  %v494_v7 = vld [vmem:[%s2529_s16 + $0x420] sm:$0xff] }
  0x26   : > { %403 = vst [vmem:[%s2534_s17 + $0xb0] sm:$0xff] %v402_v24  ;;  %v496_v8 = vld [vmem:[%s2529_s16 + $0x428] sm:$0xff]  ;;  %v498_v9 = vld [vmem:[%s2529_s16 + $0x430] sm:$0xff]  ;;  %v500_v10 = vld [vmem:[%s2529_s16 + $0x438] sm:$0xff] }
  0x27   : > { %405 = vst [vmem:[%s2534_s17 + $0xb8] sm:$0xff] %v404_v25  ;;  %v502_v11 = vld [vmem:[%s2529_s16 + $0x440] sm:$0xff]  ;;  %v504_v12 = vld [vmem:[%s2529_s16 + $0x448] sm:$0xff]  ;;  %v506_v13 = vld [vmem:[%s2529_s16 + $0x450] sm:$0xff] }
  0x28   : > { %407 = vst [vmem:[%s2534_s17 + $0xc0] sm:$0xff] %v406_v26  ;;  %v508_v14 = vld [vmem:[%s2529_s16 + $0x458] sm:$0xff]  ;;  %v510_v15 = vld [vmem:[%s2529_s16 + $0x460] sm:$0xff]  ;;  %v512_v16 = vld [vmem:[%s2529_s16 + $0x468] sm:$0xff] }
  0x29   : > { %409 = vst [vmem:[%s2534_s17 + $0xc8] sm:$0xff] %v408_v27  ;;  %v514_v17 = vld [vmem:[%s2529_s16 + $0x470] sm:$0xff]  ;;  %v516_v18 = vld [vmem:[%s2529_s16 + $0x478] sm:$0xff]  ;;  %v518_v19 = vld [vmem:[%s2529_s16 + $0x500] sm:$0xff] }
  0x2a   : > { %411 = vst [vmem:[%s2534_s17 + $0xd0] sm:$0xff] %v410_v28  ;;  %v520_v20 = vld [vmem:[%s2529_s16 + $0x508] sm:$0xff]  ;;  %v522_v21 = vld [vmem:[%s2529_s16 + $0x510] sm:$0xff]  ;;  %v524_v22 = vld [vmem:[%s2529_s16 + $0x518] sm:$0xff] }
  0x2b   : > { %413 = vst [vmem:[%s2534_s17 + $0xd8] sm:$0xff] %v412_v29  ;;  %v526_v23 = vld [vmem:[%s2529_s16 + $0x520] sm:$0xff]  ;;  %v528_v24 = vld [vmem:[%s2529_s16 + $0x528] sm:$0xff]  ;;  %v530_v25 = vld [vmem:[%s2529_s16 + $0x530] sm:$0xff] }
  0x2c   : > { %415 = vst [vmem:[%s2534_s17 + $0xe0] sm:$0xff] %v414_v30  ;;  %v532_v26 = vld [vmem:[%s2529_s16 + $0x538] sm:$0xff]  ;;  %v534_v27 = vld [vmem:[%s2529_s16 + $0x540] sm:$0xff]  ;;  %v536_v28 = vld [vmem:[%s2529_s16 + $0x548] sm:$0xff] }
  0x2d   : > { %417 = vst [vmem:[%s2534_s17 + $0xe8] sm:$0xff] %v416_v31  ;;  %v538_v29 = vld [vmem:[%s2529_s16 + $0x550] sm:$0xff]  ;;  %v540_v30 = vld [vmem:[%s2529_s16 + $0x558] sm:$0xff]  ;;  %v542_v31 = vld [vmem:[%s2529_s16 + $0x560] sm:$0xff] }
  0x2e   : > { %419 = vst [vmem:[%s2534_s17 + $0xf0] sm:$0xff] %v418_v32  ;;  %v544_v32 = vld [vmem:[%s2529_s16 + $0x568] sm:$0xff] }
  0x2f   : > { %421 = vst [vmem:[%s2534_s17 + $0xf8] sm:$0xff] %v420_v33  ;;  %v546_v33 = vld [vmem:[%s2529_s16 + $0x570] sm:$0xff] }
  0x30   : > { %423 = vst [vmem:[%s2534_s17 + $0x100] sm:$0xff] %v422_v34  ;;  %v548_v34 = vld [vmem:[%s2529_s16 + $0x578] sm:$0xff] }
  0x31   : > { %425 = vst [vmem:[%s2534_s17 + $0x108] sm:$0xff] %v424_v35  ;;  %v550_v35 = vld [vmem:[%s2529_s16 + $0x600] sm:$0xff] }
  0x32   : > { %427 = vst [vmem:[%s2534_s17 + $0x110] sm:$0xff] %v426_v36  ;;  %v552_v36 = vld [vmem:[%s2529_s16 + $0x608] sm:$0xff] }
  0x33   : > { %429 = vst [vmem:[%s2534_s17 + $0x118] sm:$0xff] %v428_v37  ;;  %v554_v37 = vld [vmem:[%s2529_s16 + $0x610] sm:$0xff] }
  0x34   : > { %431 = vst [vmem:[%s2534_s17 + $0x120] sm:$0xff] %v430_v38  ;;  %v556_v38 = vld [vmem:[%s2529_s16 + $0x618] sm:$0xff] }
  0x35   : > { %433 = vst [vmem:[%s2534_s17 + $0x128] sm:$0xff] %v432_v39  ;;  %v558_v39 = vld [vmem:[%s2529_s16 + $0x620] sm:$0xff] }
  0x36   : > { %435 = vst [vmem:[%s2534_s17 + $0x130] sm:$0xff] %v434_v40  ;;  %v560_v40 = vld [vmem:[%s2529_s16 + $0x628] sm:$0xff] }
  0x37   : > { %437 = vst [vmem:[%s2534_s17 + $0x138] sm:$0xff] %v436_v41  ;;  %v562_v41 = vld [vmem:[%s2529_s16 + $0x630] sm:$0xff] }
  0x38   : > { %439 = vst [vmem:[%s2534_s17 + $0x140] sm:$0xff] %v438_v42  ;;  %v564_v42 = vld [vmem:[%s2529_s16 + $0x638] sm:$0xff] }
  0x39   : > { %441 = vst [vmem:[%s2534_s17 + $0x148] sm:$0xff] %v440_v43  ;;  %v566_v43 = vld [vmem:[%s2529_s16 + $0x640] sm:$0xff] }
  0x3a   : > { %443 = vst [vmem:[%s2534_s17 + $0x150] sm:$0xff] %v442_v44  ;;  %v568_v44 = vld [vmem:[%s2529_s16 + $0x648] sm:$0xff] }
  0x3b   : > { %445 = vst [vmem:[%s2534_s17 + $0x158] sm:$0xff] %v444_v45  ;;  %v570_v45 = vld [vmem:[%s2529_s16 + $0x650] sm:$0xff] }
  0x3c   : > { %447 = vst [vmem:[%s2534_s17 + $0x160] sm:$0xff] %v446_v46  ;;  %v572_v46 = vld [vmem:[%s2529_s16 + $0x658] sm:$0xff] }
  0x3d   : > { %449 = vst [vmem:[%s2534_s17 + $0x168] sm:$0xff] %v448_v47  ;;  %v574_v47 = vld [vmem:[%s2529_s16 + $0x660] sm:$0xff] }
  0x3e   : > { %451 = vst [vmem:[%s2534_s17 + $0x170] sm:$0xff] %v450_v48  ;;  %v576_v48 = vld [vmem:[%s2529_s16 + $0x668] sm:$0xff] }
  0x3f   : > { %453 = vst [vmem:[%s2534_s17 + $0x178] sm:$0xff] %v452_v49  ;;  %v578_v49 = vld [vmem:[%s2529_s16 + $0x670] sm:$0xff] }
  0x40   : > { %455 = vst [vmem:[%s2534_s17 + $0x180] sm:$0xff] %v454_v50  ;;  %v580_v50 = vld [vmem:[%s2529_s16 + $0x678] sm:$0xff] }
  0x41   : > { %457 = vst [vmem:[%s2534_s17 + $0x188] sm:$0xff] %v456_v51  ;;  %v582_v51 = vld [vmem:[%s2529_s16 + $0x700] sm:$0xff] }
  0x42   : > { %459 = vst [vmem:[%s2534_s17 + $0x190] sm:$0xff] %v458_v52  ;;  %v584_v52 = vld [vmem:[%s2529_s16 + $0x708] sm:$0xff] }
  0x43   : > { %461 = vst [vmem:[%s2534_s17 + $0x198] sm:$0xff] %v460_v53  ;;  %v586_v53 = vld [vmem:[%s2529_s16 + $0x710] sm:$0xff] }
  0x44   : > { %463 = vst [vmem:[%s2534_s17 + $0x1a0] sm:$0xff] %v462_v54  ;;  %v588_v54 = vld [vmem:[%s2529_s16 + $0x718] sm:$0xff] }
  0x45   : > { %465 = vst [vmem:[%s2534_s17 + $0x1a8] sm:$0xff] %v464_v55  ;;  %v590_v55 = vld [vmem:[%s2529_s16 + $0x720] sm:$0xff] }
  0x46   : > { %467 = vst [vmem:[%s2534_s17 + $0x1b0] sm:$0xff] %v466_v56  ;;  %v592_v56 = vld [vmem:[%s2529_s16 + $0x728] sm:$0xff] }
  0x47   : > { %469 = vst [vmem:[%s2534_s17 + $0x1b8] sm:$0xff] %v468_v57  ;;  %v594_v57 = vld [vmem:[%s2529_s16 + $0x730] sm:$0xff] }
  0x48   : > { %471 = vst [vmem:[%s2534_s17 + $0x1c0] sm:$0xff] %v470_v58  ;;  %v596_v58 = vld [vmem:[%s2529_s16 + $0x738] sm:$0xff] }
  0x49   : > { %473 = vst [vmem:[%s2534_s17 + $0x1c8] sm:$0xff] %v472_v59  ;;  %v598_v59 = vld [vmem:[%s2529_s16 + $0x740] sm:$0xff] }
  0x4a   : > { %475 = vst [vmem:[%s2534_s17 + $0x1d0] sm:$0xff] %v474_v60  ;;  %v600_v60 = vld [vmem:[%s2529_s16 + $0x748] sm:$0xff] }
  0x4b   : > { %477 = vst [vmem:[%s2534_s17 + $0x1d8] sm:$0xff] %v476_v61  ;;  %v602_v61 = vld [vmem:[%s2529_s16 + $0x750] sm:$0xff] }
  0x4c   : > { %479 = vst [vmem:[%s2534_s17 + $0x1e0] sm:$0xff] %v478_v62  ;;  %v604_v62 = vld [vmem:[%s2529_s16 + $0x758] sm:$0xff] }
  0x4d   : > { %481 = vst [vmem:[%s2534_s17 + $0x1e8] sm:$0xff] %v480_v63  ;;  %v606_v63 = vld [vmem:[%s2529_s16 + $0x760] sm:$0xff] }
  0x4e   : > { %483 = vst [vmem:[%s2534_s17 + $0x1f0] sm:$0xff] %v482_v0  ;;  %v608_v0 = vld [vmem:[%s2529_s16 + $0x768] sm:$0xff] }
  0x4f   : > { %485 = vst [vmem:[%s2534_s17 + $0x1f8] sm:$0xff] %v484_v2  ;;  %v610_v2 = vld [vmem:[%s2529_s16 + $0x770] sm:$0xff] }
  0x50   : > { %487 = vst [vmem:[%s2534_s17 + $0x200] sm:$0xff] %v486_v3  ;;  %v612_v3 = vld [vmem:[%s2529_s16 + $0x778] sm:$0xff] }
  0x51   : > { %489 = vst [vmem:[%s2534_s17 + $0x208] sm:$0xff] %v488_v4 }
  0x52   : > { %491 = vst [vmem:[%s2534_s17 + $0x210] sm:$0xff] %v490_v5 }
  0x53   : > { %493 = vst [vmem:[%s2534_s17 + $0x218] sm:$0xff] %v492_v6 }
  0x54   : > { %495 = vst [vmem:[%s2534_s17 + $0x220] sm:$0xff] %v494_v7 }
  0x55   : > { %497 = vst [vmem:[%s2534_s17 + $0x228] sm:$0xff] %v496_v8 }
  0x56   : > { %499 = vst [vmem:[%s2534_s17 + $0x230] sm:$0xff] %v498_v9 }
  0x57   : > { %501 = vst [vmem:[%s2534_s17 + $0x238] sm:$0xff] %v500_v10 }
  0x58   : > { %503 = vst [vmem:[%s2534_s17 + $0x240] sm:$0xff] %v502_v11 }
  0x59   : > { %505 = vst [vmem:[%s2534_s17 + $0x248] sm:$0xff] %v504_v12 }
  0x5a   : > { %507 = vst [vmem:[%s2534_s17 + $0x250] sm:$0xff] %v506_v13 }
  0x5b   : > { %509 = vst [vmem:[%s2534_s17 + $0x258] sm:$0xff] %v508_v14 }
  0x5c   : > { %511 = vst [vmem:[%s2534_s17 + $0x260] sm:$0xff] %v510_v15 }
  0x5d   : > { %513 = vst [vmem:[%s2534_s17 + $0x268] sm:$0xff] %v512_v16 }
  0x5e   : > { %515 = vst [vmem:[%s2534_s17 + $0x270] sm:$0xff] %v514_v17 }
  0x5f   : > { %517 = vst [vmem:[%s2534_s17 + $0x278] sm:$0xff] %v516_v18 }
  0x60   : > { %519 = vst [vmem:[%s2534_s17 + $0x280] sm:$0xff] %v518_v19 }
  0x61   : > { %521 = vst [vmem:[%s2534_s17 + $0x288] sm:$0xff] %v520_v20 }
  0x62   : > { %523 = vst [vmem:[%s2534_s17 + $0x290] sm:$0xff] %v522_v21 }
  0x63   : > { %525 = vst [vmem:[%s2534_s17 + $0x298] sm:$0xff] %v524_v22 }
  0x64   : > { %527 = vst [vmem:[%s2534_s17 + $0x2a0] sm:$0xff] %v526_v23 }
  0x65   : > { %529 = vst [vmem:[%s2534_s17 + $0x2a8] sm:$0xff] %v528_v24 }
  0x66   : > { %531 = vst [vmem:[%s2534_s17 + $0x2b0] sm:$0xff] %v530_v25 }
  0x67   : > { %533 = vst [vmem:[%s2534_s17 + $0x2b8] sm:$0xff] %v532_v26 }
  0x68   : > { %535 = vst [vmem:[%s2534_s17 + $0x2c0] sm:$0xff] %v534_v27 }
  0x69   : > { %537 = vst [vmem:[%s2534_s17 + $0x2c8] sm:$0xff] %v536_v28 }
  0x6a   : > { %539 = vst [vmem:[%s2534_s17 + $0x2d0] sm:$0xff] %v538_v29 }
  0x6b   : > { %541 = vst [vmem:[%s2534_s17 + $0x2d8] sm:$0xff] %v540_v30 }
  0x6c   : > { %543 = vst [vmem:[%s2534_s17 + $0x2e0] sm:$0xff] %v542_v31 }
  0x6d   : > { %545 = vst [vmem:[%s2534_s17 + $0x2e8] sm:$0xff] %v544_v32 }
  0x6e   : > { %547 = vst [vmem:[%s2534_s17 + $0x2f0] sm:$0xff] %v546_v33 }
  0x6f   : > { %549 = vst [vmem:[%s2534_s17 + $0x2f8] sm:$0xff] %v548_v34 }
  0x70   : > { %551 = vst [vmem:[%s2534_s17 + $0x300] sm:$0xff] %v550_v35 }
  0x71   : > { %553 = vst [vmem:[%s2534_s17 + $0x308] sm:$0xff] %v552_v36 }
  0x72   : > { %555 = vst [vmem:[%s2534_s17 + $0x310] sm:$0xff] %v554_v37 }
  0x73   : > { %557 = vst [vmem:[%s2534_s17 + $0x318] sm:$0xff] %v556_v38 }
  0x74   : > { %559 = vst [vmem:[%s2534_s17 + $0x320] sm:$0xff] %v558_v39 }
  0x75   : > { %561 = vst [vmem:[%s2534_s17 + $0x328] sm:$0xff] %v560_v40 }
  0x76   : > { %563 = vst [vmem:[%s2534_s17 + $0x330] sm:$0xff] %v562_v41 }
  0x77   : > { %565 = vst [vmem:[%s2534_s17 + $0x338] sm:$0xff] %v564_v42 }
  0x78   : > { %567 = vst [vmem:[%s2534_s17 + $0x340] sm:$0xff] %v566_v43 }
  0x79   : > { %569 = vst [vmem:[%s2534_s17 + $0x348] sm:$0xff] %v568_v44 }
  0x7a   : > { %571 = vst [vmem:[%s2534_s17 + $0x350] sm:$0xff] %v570_v45 }
  0x7b   : > { %573 = vst [vmem:[%s2534_s17 + $0x358] sm:$0xff] %v572_v46 }
  0x7c   : > { %575 = vst [vmem:[%s2534_s17 + $0x360] sm:$0xff] %v574_v47 }
  0x7d   : > { %577 = vst [vmem:[%s2534_s17 + $0x368] sm:$0xff] %v576_v48 }
  0x7e   : > { %579 = vst [vmem:[%s2534_s17 + $0x370] sm:$0xff] %v578_v49 }
  0x7f   : > { %581 = vst [vmem:[%s2534_s17 + $0x378] sm:$0xff] %v580_v50 }
  0x80   : > { %583 = vst [vmem:[%s2534_s17 + $0x380] sm:$0xff] %v582_v51 }
  0x81   : > { %585 = vst [vmem:[%s2534_s17 + $0x388] sm:$0xff] %v584_v52 }
  0x82   : > { %587 = vst [vmem:[%s2534_s17 + $0x390] sm:$0xff] %v586_v53 }
  0x83   : > { %589 = vst [vmem:[%s2534_s17 + $0x398] sm:$0xff] %v588_v54 }
  0x84   : > { %591 = vst [vmem:[%s2534_s17 + $0x3a0] sm:$0xff] %v590_v55 }
  0x85   : > { %593 = vst [vmem:[%s2534_s17 + $0x3a8] sm:$0xff] %v592_v56 }
  0x86   : > { %595 = vst [vmem:[%s2534_s17 + $0x3b0] sm:$0xff] %v594_v57 }
  0x87   : > { %597 = vst [vmem:[%s2534_s17 + $0x3b8] sm:$0xff] %v596_v58 }
  0x88   : > { %599 = vst [vmem:[%s2534_s17 + $0x3c0] sm:$0xff] %v598_v59 }
  0x89   : > { %601 = vst [vmem:[%s2534_s17 + $0x3c8] sm:$0xff] %v600_v60 }
  0x8a   : > { %603 = vst [vmem:[%s2534_s17 + $0x3d0] sm:$0xff] %v602_v61 }
  0x8b   : > { %605 = vst [vmem:[%s2534_s17 + $0x3d8] sm:$0xff] %v604_v62 }
  0x8c   : > { %607 = vst [vmem:[%s2534_s17 + $0x3e0] sm:$0xff] %v606_v63 }
  0x8d   : > { %609 = vst [vmem:[%s2534_s17 + $0x3e8] sm:$0xff] %v608_v0 }
  0x8e   : > { %611 = vst [vmem:[%s2534_s17 + $0x3f0] sm:$0xff] %v610_v2 }
  0x8f   : > { %613 = vst [vmem:[%s2534_s17 + $0x3f8] sm:$0xff] %v612_v3 }
  0x90 PF: > { %p2174_p2 = scmp.ge.s32.totalorder %s2489_s8, 1  ;;  %p618_p3 = scmp.lt.s32.totalorder %s2489_s8, 3 }
  0x92   : > { %p619_p4 = pnand %p2174_p2, %p618_p3 }
  0x93   : > { %s625_s18 = sand.u32 (!%p619_p4), 1, %s2167_s9   ;;  %s2440_s21 = sshll.u32 (!%p619_p4), %s2481_s6, 7 }
  0x94   : > { %622 = sbr.rel (%p619_p4) target bundleno = 607 (0x25f), region = 54  ;;  %s2175_s19 = sshll.u32 (!%p619_p4), %s625_s18, 10 }
  0x95   : > { %s2795_s20 = scalar_lea.vmem (!%p619_p4), [#allocation0], %s2175_s19  ;;  %s2837_s24 = scalar_lea.vmem (!%p619_p4), %s3069_s1, %s2440_s21 }
  0x99   : > { %2466 = vset.pattern.permute.xlu2 %v2501_v1  ;;  %2465 = vset.pattern.permute.xlu1 %v2501_v1  ;;  %v2183_v4 = vld [vmem:[%s2795_s20 + $0x20] sm:$0xff]  ;;  %v2179_v5 = vld [vmem:[%s2795_s20 + $0x10] sm:$0xff]  ;;  %v2185_v7 = vld [vmem:[%s2795_s20 + $0x28] sm:$0xff] }
  0x9a   : > { %v645_v6 = vld [vmem:[%s2795_s20] sm:$0xff]  ;;  %670 = vperm.xlu2 %2466, %v2183_v4   ;;  %658 = vperm.xlu1 %2465, %v2179_v5   ;;  %v2181_v8 = vld [vmem:[%s2795_s20 + $0x18] sm:$0xff]  ;;  %v2177_v9 = vld [vmem:[%s2795_s20 + $0x8] sm:$0xff] }
  0x9b   : > { %646 = vperm.xlu0 %4, %v645_v6   ;;  %v2191_v10 = vld [vmem:[%s2795_s20 + $0x40] sm:$0xff]  ;;  %v2189_v11 = vld [vmem:[%s2795_s20 + $0x38] sm:$0xff]  ;;  %v2187_v12 = vld [vmem:[%s2795_s20 + $0x30] sm:$0xff] }
  0x9c   : > { %v2197_v13 = vld [vmem:[%s2795_s20 + $0x58] sm:$0xff]  ;;  %v2195_v14 = vld [vmem:[%s2795_s20 + $0x50] sm:$0xff]  ;;  %v2193_v15 = vld [vmem:[%s2795_s20 + $0x48] sm:$0xff] }
  0x9d   : > { %v2203_v16 = vld [vmem:[%s2795_s20 + $0x70] sm:$0xff]  ;;  %v2201_v17 = vld [vmem:[%s2795_s20 + $0x68] sm:$0xff]  ;;  %v2199_v18 = vld [vmem:[%s2795_s20 + $0x60] sm:$0xff] }
  0x9e   : > { %v2209_v19 = vld [vmem:[%s2795_s20 + $0x88] sm:$0xff]  ;;  %v2207_v20 = vld [vmem:[%s2795_s20 + $0x80] sm:$0xff]  ;;  %v2205_v21 = vld [vmem:[%s2795_s20 + $0x78] sm:$0xff] }
  0x9f   : > { %v2215_v22 = vld [vmem:[%s2795_s20 + $0xa0] sm:$0xff]  ;;  %v2213_v23 = vld [vmem:[%s2795_s20 + $0x98] sm:$0xff]  ;;  %v2211_v24 = vld [vmem:[%s2795_s20 + $0x90] sm:$0xff] }
  0xa0   : > { %v2221_v25 = vld [vmem:[%s2795_s20 + $0xb8] sm:$0xff]  ;;  %v2219_v26 = vld [vmem:[%s2795_s20 + $0xb0] sm:$0xff]  ;;  %v2217_v27 = vld [vmem:[%s2795_s20 + $0xa8] sm:$0xff] }
  0xa1   : > { %v2227_v28 = vld [vmem:[%s2795_s20 + $0xd0] sm:$0xff]  ;;  %v2225_v29 = vld [vmem:[%s2795_s20 + $0xc8] sm:$0xff]  ;;  %v2223_v30 = vld [vmem:[%s2795_s20 + $0xc0] sm:$0xff] }
  0xa2   : > { %676 = vperm.xlu2 %2466, %v2185_v7   ;;  %664 = vperm.xlu1 %2465, %v2181_v8   ;;  %v2233_v31 = vld [vmem:[%s2795_s20 + $0xe8] sm:$0xff]  ;;  %v2231_v32 = vld [vmem:[%s2795_s20 + $0xe0] sm:$0xff]  ;;  %v2229_v33 = vld [vmem:[%s2795_s20 + $0xd8] sm:$0xff] }
  0xa3   : > { %652 = vperm.xlu0 %4, %v2177_v9   ;;  %v2239_v34 = vld [vmem:[%s2795_s20 + $0x100] sm:$0xff]  ;;  %v2237_v35 = vld [vmem:[%s2795_s20 + $0xf8] sm:$0xff]  ;;  %v2235_v36 = vld [vmem:[%s2795_s20 + $0xf0] sm:$0xff] }
  0xa4   : > { %v2245_v37 = vld [vmem:[%s2795_s20 + $0x118] sm:$0xff]  ;;  %v2243_v38 = vld [vmem:[%s2795_s20 + $0x110] sm:$0xff]  ;;  %v2241_v39 = vld [vmem:[%s2795_s20 + $0x108] sm:$0xff] }
  0xa5   : > { %v2251_v41 = vld [vmem:[%s2795_s20 + $0x130] sm:$0xff]  ;;  %v2249_v42 = vld [vmem:[%s2795_s20 + $0x128] sm:$0xff]  ;;  %v2247_v43 = vld [vmem:[%s2795_s20 + $0x120] sm:$0xff] }
  0xa6   : > { %v2257_v45 = vld [vmem:[%s2795_s20 + $0x148] sm:$0xff]  ;;  %v2255_v46 = vld [vmem:[%s2795_s20 + $0x140] sm:$0xff]  ;;  %v2253_v47 = vld [vmem:[%s2795_s20 + $0x138] sm:$0xff] }
  0xa7   : > { %v2263_v49 = vld [vmem:[%s2795_s20 + $0x160] sm:$0xff]  ;;  %v2261_v50 = vld [vmem:[%s2795_s20 + $0x158] sm:$0xff]  ;;  %v2259_v51 = vld [vmem:[%s2795_s20 + $0x150] sm:$0xff] }
  0xa8   : > { %v2269_v55 = vld [vmem:[%s2795_s20 + $0x178] sm:$0xff]  ;;  %v2267_v56 = vld [vmem:[%s2795_s20 + $0x170] sm:$0xff]  ;;  %v2265_v57 = vld [vmem:[%s2795_s20 + $0x168] sm:$0xff] }
  0xa9   : > { %v2275_v61 = vld [vmem:[%s2795_s20 + $0x190] sm:$0xff]  ;;  %v2273_v62 = vld [vmem:[%s2795_s20 + $0x188] sm:$0xff]  ;;  %v2271_v63 = vld [vmem:[%s2795_s20 + $0x180] sm:$0xff] }
  0xaa   : > { %694 = vperm.xlu2 %2466, %v2191_v10   ;;  %688 = vperm.xlu1 %2465, %v2189_v11   ;;  %v2281_v4 = vld [vmem:[%s2795_s20 + $0x1a8] sm:$0xff]  ;;  %v2279_v5 = vld [vmem:[%s2795_s20 + $0x1a0] sm:$0xff]  ;;  %v2277_v6 = vld [vmem:[%s2795_s20 + $0x198] sm:$0xff] }
  0xab   : > { %682 = vperm.xlu0 %4, %v2187_v12   ;;  %v2287_v10 = vld [vmem:[%s2795_s20 + $0x1c0] sm:$0xff]  ;;  %v2285_v11 = vld [vmem:[%s2795_s20 + $0x1b8] sm:$0xff]  ;;  %v2283_v12 = vld [vmem:[%s2795_s20 + $0x1b0] sm:$0xff] }
  0xb2   : > { %712 = vperm.xlu2 %2466, %v2197_v13   ;;  %706 = vperm.xlu1 %2465, %v2195_v14  }
  0xb3   : > { %700 = vperm.xlu0 %4, %v2193_v15  }
  0xba   : > { %730 = vperm.xlu2 %2466, %v2203_v16   ;;  %724 = vperm.xlu1 %2465, %v2201_v17   ;;  %v2293_v16 = vld [vmem:[%s2795_s20 + $0x1d8] sm:$0xff]  ;;  %v2291_v17 = vld [vmem:[%s2795_s20 + $0x1d0] sm:$0xff] }
  0xbb   : > { %718 = vperm.xlu0 %4, %v2199_v18   ;;  %v2289_v18 = vld [vmem:[%s2795_s20 + $0x1c8] sm:$0xff] }
  0xc2   : > { %748 = vperm.xlu2 %2466, %v2209_v19   ;;  %742 = vperm.xlu1 %2465, %v2207_v20  }
  0xc3   : > { %736 = vperm.xlu0 %4, %v2205_v21  }
  0xca   : > { %766 = vperm.xlu2 %2466, %v2215_v22   ;;  %760 = vperm.xlu1 %2465, %v2213_v23   ;;  %v2299_v22 = vld [vmem:[%s2795_s20 + $0x1f0] sm:$0xff]  ;;  %v2297_v23 = vld [vmem:[%s2795_s20 + $0x1e8] sm:$0xff] }
  0xcb   : > { %754 = vperm.xlu0 %4, %v2211_v24   ;;  %v2295_v24 = vld [vmem:[%s2795_s20 + $0x1e0] sm:$0xff] }
  0xd2   : > { %784 = vperm.xlu2 %2466, %v2221_v25   ;;  %778 = vperm.xlu1 %2465, %v2219_v26  }
  0xd3   : > { %772 = vperm.xlu0 %4, %v2217_v27  }
  0xda   : > { %802 = vperm.xlu2 %2466, %v2227_v28   ;;  %796 = vperm.xlu1 %2465, %v2225_v29   ;;  %v2305_v28 = vld [vmem:[%s2795_s20 + $0x208] sm:$0xff]  ;;  %v2303_v29 = vld [vmem:[%s2795_s20 + $0x200] sm:$0xff] }
  0xdb   : > { %790 = vperm.xlu0 %4, %v2223_v30   ;;  %v2301_v30 = vld [vmem:[%s2795_s20 + $0x1f8] sm:$0xff] }
  0xe2   : > { %820 = vperm.xlu2 %2466, %v2233_v31   ;;  %814 = vperm.xlu1 %2465, %v2231_v32  }
  0xe3   : > { %808 = vperm.xlu0 %4, %v2229_v33  }
  0xea   : > { %838 = vperm.xlu2 %2466, %v2239_v34   ;;  %832 = vperm.xlu1 %2465, %v2237_v35   ;;  %v2311_v34 = vld [vmem:[%s2795_s20 + $0x220] sm:$0xff]  ;;  %v2309_v35 = vld [vmem:[%s2795_s20 + $0x218] sm:$0xff] }
  0xeb   : > { %826 = vperm.xlu0 %4, %v2235_v36   ;;  %v2307_v36 = vld [vmem:[%s2795_s20 + $0x210] sm:$0xff] }
  0xf2   : > { %856 = vperm.xlu2 %2466, %v2245_v37   ;;  %850 = vperm.xlu1 %2465, %v2243_v38  }
  0xf3   : > { %844 = vperm.xlu0 %4, %v2241_v39  }
  0xf4   : > { %v671_v40 = vpop.permute.xlu2 %670 }
  0xf5   : > { %1719 = vst [vmem:[%s2837_s24 + $0x20] sm:$0xff] %v671_v40  ;;  %v2317_v40 = vld [vmem:[%s2795_s20 + $0x238] sm:$0xff] }
  0xfa   : > { %874 = vperm.xlu2 %2466, %v2251_v41   ;;  %868 = vperm.xlu1 %2465, %v2249_v42   ;;  %v2315_v41 = vld [vmem:[%s2795_s20 + $0x230] sm:$0xff]  ;;  %v2313_v42 = vld [vmem:[%s2795_s20 + $0x228] sm:$0xff] }
  0xfb   : > { %862 = vperm.xlu0 %4, %v2247_v43  }
  0xfc   : > { %v677_v44 = vpop.permute.xlu2 %676 }
  0xfd   : > { %1721 = vst [vmem:[%s2837_s24 + $0x28] sm:$0xff] %v677_v44 }
 0x102   : > { %892 = vperm.xlu2 %2466, %v2257_v45   ;;  %886 = vperm.xlu1 %2465, %v2255_v46   ;;  %v2323_v46 = vld [vmem:[%s2795_s20 + $0x250] sm:$0xff] }
 0x103   : > { %880 = vperm.xlu0 %4, %v2253_v47   ;;  %v2321_v47 = vld [vmem:[%s2795_s20 + $0x248] sm:$0xff] }
 0x104   : > { %v695_v48 = vpop.permute.xlu2 %694 }
 0x105   : > { %1727 = vst [vmem:[%s2837_s24 + $0x40] sm:$0xff] %v695_v48  ;;  %v2319_v48 = vld [vmem:[%s2795_s20 + $0x240] sm:$0xff] }
 0x10a   : > { %910 = vperm.xlu2 %2466, %v2263_v49   ;;  %904 = vperm.xlu1 %2465, %v2261_v50  }
 0x10b   : > { %898 = vperm.xlu0 %4, %v2259_v51  }
 0x10c   : > { %v713_v52 = vpop.permute.xlu2 %712  ;;  %v659_v53 = vpop.permute.xlu1 %658 }
 0x10d   : > { %v647_v54 = vpop.permute.xlu0 %646  ;;  %1733 = vst [vmem:[%s2837_s24 + $0x58] sm:$0xff] %v713_v52  ;;  %v2329_v52 = vld [vmem:[%s2795_s20 + $0x268] sm:$0xff] }
 0x10e   : > { %1715 = vst [vmem:[%s2837_s24 + $0x10] sm:$0xff] %v659_v53  ;;  %v2327_v53 = vld [vmem:[%s2795_s20 + $0x260] sm:$0xff] }
 0x10f   : > { %1711 = vst [vmem:[%s2837_s24] sm:$0xff] %v647_v54  ;;  %v2325_v54 = vld [vmem:[%s2795_s20 + $0x258] sm:$0xff] }
 0x112   : > { %928 = vperm.xlu2 %2466, %v2269_v55   ;;  %922 = vperm.xlu1 %2465, %v2267_v56  }
 0x113   : > { %916 = vperm.xlu0 %4, %v2265_v57  }
 0x114   : > { %v731_v58 = vpop.permute.xlu2 %730  ;;  %v665_v59 = vpop.permute.xlu1 %664 }
 0x115   : > { %v653_v60 = vpop.permute.xlu0 %652  ;;  %1739 = vst [vmem:[%s2837_s24 + $0x70] sm:$0xff] %v731_v58  ;;  %v2335_v58 = vld [vmem:[%s2795_s20 + $0x280] sm:$0xff] }
 0x116   : > { %1717 = vst [vmem:[%s2837_s24 + $0x18] sm:$0xff] %v665_v59  ;;  %v2333_v59 = vld [vmem:[%s2795_s20 + $0x278] sm:$0xff] }
 0x117   : > { %1713 = vst [vmem:[%s2837_s24 + $0x8] sm:$0xff] %v653_v60  ;;  %v2331_v60 = vld [vmem:[%s2795_s20 + $0x270] sm:$0xff] }
 0x11a   : > { %946 = vperm.xlu2 %2466, %v2275_v61   ;;  %940 = vperm.xlu1 %2465, %v2273_v62  }
 0x11b   : > { %934 = vperm.xlu0 %4, %v2271_v63  }
 0x11c   : > { %v749_v0 = vpop.permute.xlu2 %748  ;;  %v689_v2 = vpop.permute.xlu1 %688 }
 0x11d   : > { %v683_v3 = vpop.permute.xlu0 %682  ;;  %1745 = vst [vmem:[%s2837_s24 + $0x108] sm:$0xff] %v749_v0  ;;  %v2341_v0 = vld [vmem:[%s2795_s20 + $0x298] sm:$0xff] }
 0x11e   : > { %1725 = vst [vmem:[%s2837_s24 + $0x38] sm:$0xff] %v689_v2  ;;  %v2339_v2 = vld [vmem:[%s2795_s20 + $0x290] sm:$0xff] }
 0x11f   : > { %1723 = vst [vmem:[%s2837_s24 + $0x30] sm:$0xff] %v683_v3  ;;  %v2337_v3 = vld [vmem:[%s2795_s20 + $0x288] sm:$0xff] }
 0x122   : > { %964 = vperm.xlu2 %2466, %v2281_v4   ;;  %958 = vperm.xlu1 %2465, %v2279_v5  }
 0x123   : > { %952 = vperm.xlu0 %4, %v2277_v6  }
 0x124   : > { %v767_v7 = vpop.permute.xlu2 %766  ;;  %v707_v8 = vpop.permute.xlu1 %706 }
 0x125   : > { %v701_v9 = vpop.permute.xlu0 %700  ;;  %1751 = vst [vmem:[%s2837_s24 + $0x120] sm:$0xff] %v767_v7  ;;  %v2347_v7 = vld [vmem:[%s2795_s20 + $0x2b0] sm:$0xff] }
 0x126   : > { %1731 = vst [vmem:[%s2837_s24 + $0x50] sm:$0xff] %v707_v8  ;;  %v2345_v8 = vld [vmem:[%s2795_s20 + $0x2a8] sm:$0xff] }
 0x127   : > { %1729 = vst [vmem:[%s2837_s24 + $0x48] sm:$0xff] %v701_v9  ;;  %v2343_v9 = vld [vmem:[%s2795_s20 + $0x2a0] sm:$0xff] }
 0x12a   : > { %982 = vperm.xlu2 %2466, %v2287_v10   ;;  %976 = vperm.xlu1 %2465, %v2285_v11  }
 0x12b   : > { %970 = vperm.xlu0 %4, %v2283_v12  }
 0x12c   : > { %v785_v13 = vpop.permute.xlu2 %784  ;;  %v725_v14 = vpop.permute.xlu1 %724 }
 0x12d   : > { %v719_v15 = vpop.permute.xlu0 %718  ;;  %1757 = vst [vmem:[%s2837_s24 + $0x138] sm:$0xff] %v785_v13  ;;  %v2353_v13 = vld [vmem:[%s2795_s20 + $0x2c8] sm:$0xff] }
 0x12e   : > { %1737 = vst [vmem:[%s2837_s24 + $0x68] sm:$0xff] %v725_v14  ;;  %v2351_v14 = vld [vmem:[%s2795_s20 + $0x2c0] sm:$0xff] }
 0x12f   : > { %1735 = vst [vmem:[%s2837_s24 + $0x60] sm:$0xff] %v719_v15  ;;  %v2349_v15 = vld [vmem:[%s2795_s20 + $0x2b8] sm:$0xff] }
 0x132   : > { %1000 = vperm.xlu2 %2466, %v2293_v16   ;;  %994 = vperm.xlu1 %2465, %v2291_v17  }
 0x133   : > { %988 = vperm.xlu0 %4, %v2289_v18  }
 0x134   : > { %v803_v19 = vpop.permute.xlu2 %802  ;;  %v743_v20 = vpop.permute.xlu1 %742 }
 0x135   : > { %v737_v21 = vpop.permute.xlu0 %736  ;;  %1763 = vst [vmem:[%s2837_s24 + $0x150] sm:$0xff] %v803_v19  ;;  %v2359_v19 = vld [vmem:[%s2795_s20 + $0x2e0] sm:$0xff] }
 0x136   : > { %1743 = vst [vmem:[%s2837_s24 + $0x100] sm:$0xff] %v743_v20  ;;  %v2357_v20 = vld [vmem:[%s2795_s20 + $0x2d8] sm:$0xff] }
 0x137   : > { %1741 = vst [vmem:[%s2837_s24 + $0x78] sm:$0xff] %v737_v21  ;;  %v2355_v21 = vld [vmem:[%s2795_s20 + $0x2d0] sm:$0xff] }
 0x13a   : > { %1018 = vperm.xlu2 %2466, %v2299_v22   ;;  %1012 = vperm.xlu1 %2465, %v2297_v23  }
 0x13b   : > { %1006 = vperm.xlu0 %4, %v2295_v24  }
 0x13c   : > { %v821_v25 = vpop.permute.xlu2 %820  ;;  %v761_v26 = vpop.permute.xlu1 %760 }
 0x13d   : > { %v755_v27 = vpop.permute.xlu0 %754  ;;  %1769 = vst [vmem:[%s2837_s24 + $0x168] sm:$0xff] %v821_v25  ;;  %v2365_v25 = vld [vmem:[%s2795_s20 + $0x2f8] sm:$0xff] }
 0x13e   : > { %1749 = vst [vmem:[%s2837_s24 + $0x118] sm:$0xff] %v761_v26  ;;  %v2363_v26 = vld [vmem:[%s2795_s20 + $0x2f0] sm:$0xff] }
 0x13f   : > { %1747 = vst [vmem:[%s2837_s24 + $0x110] sm:$0xff] %v755_v27  ;;  %v2361_v27 = vld [vmem:[%s2795_s20 + $0x2e8] sm:$0xff] }
 0x142   : > { %1036 = vperm.xlu2 %2466, %v2305_v28   ;;  %1030 = vperm.xlu1 %2465, %v2303_v29  }
 0x143   : > { %1024 = vperm.xlu0 %4, %v2301_v30  }
 0x144   : > { %v839_v31 = vpop.permute.xlu2 %838  ;;  %v779_v32 = vpop.permute.xlu1 %778 }
 0x145   : > { %v773_v33 = vpop.permute.xlu0 %772  ;;  %1775 = vst [vmem:[%s2837_s24 + $0x200] sm:$0xff] %v839_v31  ;;  %v2371_v31 = vld [vmem:[%s2795_s20 + $0x310] sm:$0xff] }
 0x146   : > { %1755 = vst [vmem:[%s2837_s24 + $0x130] sm:$0xff] %v779_v32  ;;  %v2369_v32 = vld [vmem:[%s2795_s20 + $0x308] sm:$0xff] }
 0x147   : > { %1753 = vst [vmem:[%s2837_s24 + $0x128] sm:$0xff] %v773_v33  ;;  %v2367_v33 = vld [vmem:[%s2795_s20 + $0x300] sm:$0xff] }
 0x14a   : > { %1054 = vperm.xlu2 %2466, %v2311_v34   ;;  %1048 = vperm.xlu1 %2465, %v2309_v35  }
 0x14b   : > { %1042 = vperm.xlu0 %4, %v2307_v36  }
 0x14c   : > { %v857_v37 = vpop.permute.xlu2 %856  ;;  %v797_v38 = vpop.permute.xlu1 %796 }
 0x14d   : > { %v791_v39 = vpop.permute.xlu0 %790  ;;  %1781 = vst [vmem:[%s2837_s24 + $0x218] sm:$0xff] %v857_v37  ;;  %v2377_v37 = vld [vmem:[%s2795_s20 + $0x328] sm:$0xff] }
 0x14e   : > { %1761 = vst [vmem:[%s2837_s24 + $0x148] sm:$0xff] %v797_v38  ;;  %v2375_v38 = vld [vmem:[%s2795_s20 + $0x320] sm:$0xff] }
 0x14f   : > { %1759 = vst [vmem:[%s2837_s24 + $0x140] sm:$0xff] %v791_v39  ;;  %v2373_v39 = vld [vmem:[%s2795_s20 + $0x318] sm:$0xff] }
 0x152   : > { %1072 = vperm.xlu2 %2466, %v2317_v40   ;;  %1066 = vperm.xlu1 %2465, %v2315_v41  }
 0x153   : > { %1060 = vperm.xlu0 %4, %v2313_v42  }
 0x154   : > { %v875_v43 = vpop.permute.xlu2 %874  ;;  %v815_v44 = vpop.permute.xlu1 %814 }
 0x155   : > { %v809_v45 = vpop.permute.xlu0 %808  ;;  %1787 = vst [vmem:[%s2837_s24 + $0x230] sm:$0xff] %v875_v43  ;;  %v2383_v43 = vld [vmem:[%s2795_s20 + $0x340] sm:$0xff] }
 0x156   : > { %1767 = vst [vmem:[%s2837_s24 + $0x160] sm:$0xff] %v815_v44  ;;  %v2381_v44 = vld [vmem:[%s2795_s20 + $0x338] sm:$0xff] }
 0x157   : > { %1765 = vst [vmem:[%s2837_s24 + $0x158] sm:$0xff] %v809_v45  ;;  %v2379_v45 = vld [vmem:[%s2795_s20 + $0x330] sm:$0xff] }
 0x15a   : > { %1090 = vperm.xlu2 %2466, %v2323_v46   ;;  %1084 = vperm.xlu1 %2465, %v2321_v47  }
 0x15b   : > { %1078 = vperm.xlu0 %4, %v2319_v48  }
 0x15c   : > { %v893_v49 = vpop.permute.xlu2 %892  ;;  %v833_v50 = vpop.permute.xlu1 %832 }
 0x15d   : > { %v827_v51 = vpop.permute.xlu0 %826  ;;  %1793 = vst [vmem:[%s2837_s24 + $0x248] sm:$0xff] %v893_v49  ;;  %v2389_v49 = vld [vmem:[%s2795_s20 + $0x358] sm:$0xff] }
 0x15e   : > { %1773 = vst [vmem:[%s2837_s24 + $0x178] sm:$0xff] %v833_v50  ;;  %v2387_v50 = vld [vmem:[%s2795_s20 + $0x350] sm:$0xff] }
 0x15f   : > { %1771 = vst [vmem:[%s2837_s24 + $0x170] sm:$0xff] %v827_v51  ;;  %v2385_v51 = vld [vmem:[%s2795_s20 + $0x348] sm:$0xff] }
 0x162   : > { %1108 = vperm.xlu2 %2466, %v2329_v52   ;;  %1102 = vperm.xlu1 %2465, %v2327_v53  }
 0x163   : > { %1096 = vperm.xlu0 %4, %v2325_v54  }
 0x164   : > { %v911_v55 = vpop.permute.xlu2 %910  ;;  %v851_v56 = vpop.permute.xlu1 %850 }
 0x165   : > { %v845_v57 = vpop.permute.xlu0 %844  ;;  %1799 = vst [vmem:[%s2837_s24 + $0x260] sm:$0xff] %v911_v55  ;;  %v2395_v55 = vld [vmem:[%s2795_s20 + $0x370] sm:$0xff] }
 0x166   : > { %1779 = vst [vmem:[%s2837_s24 + $0x210] sm:$0xff] %v851_v56  ;;  %v2393_v56 = vld [vmem:[%s2795_s20 + $0x368] sm:$0xff] }
 0x167   : > { %1777 = vst [vmem:[%s2837_s24 + $0x208] sm:$0xff] %v845_v57  ;;  %v2391_v57 = vld [vmem:[%s2795_s20 + $0x360] sm:$0xff] }
 0x16a   : > { %1126 = vperm.xlu2 %2466, %v2335_v58   ;;  %1120 = vperm.xlu1 %2465, %v2333_v59  }
 0x16b   : > { %1114 = vperm.xlu0 %4, %v2331_v60  }
 0x16c   : > { %v929_v61 = vpop.permute.xlu2 %928  ;;  %v869_v62 = vpop.permute.xlu1 %868 }
 0x16d   : > { %v863_v63 = vpop.permute.xlu0 %862  ;;  %1805 = vst [vmem:[%s2837_s24 + $0x278] sm:$0xff] %v929_v61  ;;  %v2401_v61 = vld [vmem:[%s2795_s20 + $0x388] sm:$0xff] }
 0x16e   : > { %1785 = vst [vmem:[%s2837_s24 + $0x228] sm:$0xff] %v869_v62  ;;  %v2399_v62 = vld [vmem:[%s2795_s20 + $0x380] sm:$0xff] }
 0x16f   : > { %1783 = vst [vmem:[%s2837_s24 + $0x220] sm:$0xff] %v863_v63  ;;  %v2397_v63 = vld [vmem:[%s2795_s20 + $0x378] sm:$0xff] }
 0x172   : > { %1144 = vperm.xlu2 %2466, %v2341_v0   ;;  %1138 = vperm.xlu1 %2465, %v2339_v2  }
 0x173   : > { %1132 = vperm.xlu0 %4, %v2337_v3  }
 0x174   : > { %v947_v4 = vpop.permute.xlu2 %946  ;;  %v887_v5 = vpop.permute.xlu1 %886 }
 0x175   : > { %v881_v6 = vpop.permute.xlu0 %880  ;;  %1811 = vst [vmem:[%s2837_s24 + $0x310] sm:$0xff] %v947_v4  ;;  %v2407_v4 = vld [vmem:[%s2795_s20 + $0x3a0] sm:$0xff] }
 0x176   : > { %1791 = vst [vmem:[%s2837_s24 + $0x240] sm:$0xff] %v887_v5  ;;  %v2405_v5 = vld [vmem:[%s2795_s20 + $0x398] sm:$0xff] }
 0x177   : > { %1789 = vst [vmem:[%s2837_s24 + $0x238] sm:$0xff] %v881_v6  ;;  %v2403_v6 = vld [vmem:[%s2795_s20 + $0x390] sm:$0xff] }
 0x17a   : > { %1162 = vperm.xlu2 %2466, %v2347_v7   ;;  %1156 = vperm.xlu1 %2465, %v2345_v8  }
 0x17b   : > { %1150 = vperm.xlu0 %4, %v2343_v9  }
 0x17c   : > { %v965_v10 = vpop.permute.xlu2 %964  ;;  %v905_v11 = vpop.permute.xlu1 %904 }
 0x17d   : > { %v899_v12 = vpop.permute.xlu0 %898  ;;  %1817 = vst [vmem:[%s2837_s24 + $0x328] sm:$0xff] %v965_v10  ;;  %v2413_v10 = vld [vmem:[%s2795_s20 + $0x3b8] sm:$0xff] }
 0x17e   : > { %1797 = vst [vmem:[%s2837_s24 + $0x258] sm:$0xff] %v905_v11  ;;  %v2411_v11 = vld [vmem:[%s2795_s20 + $0x3b0] sm:$0xff] }
 0x17f   : > { %1795 = vst [vmem:[%s2837_s24 + $0x250] sm:$0xff] %v899_v12  ;;  %v2409_v12 = vld [vmem:[%s2795_s20 + $0x3a8] sm:$0xff] }
 0x182   : > { %1180 = vperm.xlu2 %2466, %v2353_v13   ;;  %1174 = vperm.xlu1 %2465, %v2351_v14  }
 0x183   : > { %1168 = vperm.xlu0 %4, %v2349_v15  }
 0x184   : > { %v983_v16 = vpop.permute.xlu2 %982  ;;  %v923_v17 = vpop.permute.xlu1 %922 }
 0x185   : > { %v917_v18 = vpop.permute.xlu0 %916  ;;  %1823 = vst [vmem:[%s2837_s24 + $0x340] sm:$0xff] %v983_v16  ;;  %v2419_v16 = vld [vmem:[%s2795_s20 + $0x3d0] sm:$0xff] }
 0x186   : > { %1803 = vst [vmem:[%s2837_s24 + $0x270] sm:$0xff] %v923_v17  ;;  %v2417_v17 = vld [vmem:[%s2795_s20 + $0x3c8] sm:$0xff] }
 0x187   : > { %1801 = vst [vmem:[%s2837_s24 + $0x268] sm:$0xff] %v917_v18  ;;  %v2415_v18 = vld [vmem:[%s2795_s20 + $0x3c0] sm:$0xff] }
 0x18a   : > { %1198 = vperm.xlu2 %2466, %v2359_v19   ;;  %1192 = vperm.xlu1 %2465, %v2357_v20  }
 0x18b   : > { %1186 = vperm.xlu0 %4, %v2355_v21  }
 0x18c   : > { %v1001_v22 = vpop.permute.xlu2 %1000  ;;  %v941_v23 = vpop.permute.xlu1 %940 }
 0x18d   : > { %v935_v24 = vpop.permute.xlu0 %934  ;;  %1829 = vst [vmem:[%s2837_s24 + $0x358] sm:$0xff] %v1001_v22  ;;  %v2425_v22 = vld [vmem:[%s2795_s20 + $0x3e8] sm:$0xff] }
 0x18e   : > { %1809 = vst [vmem:[%s2837_s24 + $0x308] sm:$0xff] %v941_v23  ;;  %v2423_v23 = vld [vmem:[%s2795_s20 + $0x3e0] sm:$0xff] }
 0x18f   : > { %1807 = vst [vmem:[%s2837_s24 + $0x300] sm:$0xff] %v935_v24  ;;  %v2421_v24 = vld [vmem:[%s2795_s20 + $0x3d8] sm:$0xff] }
 0x192   : > { %1216 = vperm.xlu2 %2466, %v2365_v25   ;;  %1210 = vperm.xlu1 %2465, %v2363_v26  }
 0x193   : > { %1204 = vperm.xlu0 %4, %v2361_v27  }
 0x194   : > { %v1019_v28 = vpop.permute.xlu2 %1018  ;;  %v959_v29 = vpop.permute.xlu1 %958 }
 0x195   : > { %v953_v30 = vpop.permute.xlu0 %952  ;;  %1835 = vst [vmem:[%s2837_s24 + $0x370] sm:$0xff] %v1019_v28  ;;  %v2429_v28 = vld [vmem:[%s2795_s20 + $0x3f8] sm:$0xff] }
 0x196   : > { %1815 = vst [vmem:[%s2837_s24 + $0x320] sm:$0xff] %v959_v29  ;;  %v2427_v29 = vld [vmem:[%s2795_s20 + $0x3f0] sm:$0xff] }
 0x197   : > { %1813 = vst [vmem:[%s2837_s24 + $0x318] sm:$0xff] %v953_v30 }
 0x19a   : > { %1234 = vperm.xlu2 %2466, %v2371_v31   ;;  %1228 = vperm.xlu1 %2465, %v2369_v32  }
 0x19b   : > { %1222 = vperm.xlu0 %4, %v2367_v33  }
 0x19c   : > { %v1037_v34 = vpop.permute.xlu2 %1036  ;;  %v977_v35 = vpop.permute.xlu1 %976 }
 0x19d   : > { %v971_v36 = vpop.permute.xlu0 %970  ;;  %1841 = vst [vmem:[%s2837_s24 + $0x408] sm:$0xff] %v1037_v34 }
 0x19e   : > { %1821 = vst [vmem:[%s2837_s24 + $0x338] sm:$0xff] %v977_v35 }
 0x19f   : > { %1819 = vst [vmem:[%s2837_s24 + $0x330] sm:$0xff] %v971_v36 }
 0x1a2   : > { %1252 = vperm.xlu2 %2466, %v2377_v37   ;;  %1246 = vperm.xlu1 %2465, %v2375_v38  }
 0x1a3   : > { %1240 = vperm.xlu0 %4, %v2373_v39  }
 0x1a4   : > { %v1055_v40 = vpop.permute.xlu2 %1054  ;;  %v995_v41 = vpop.permute.xlu1 %994 }
 0x1a5   : > { %v989_v42 = vpop.permute.xlu0 %988  ;;  %1847 = vst [vmem:[%s2837_s24 + $0x420] sm:$0xff] %v1055_v40 }
 0x1a6   : > { %1827 = vst [vmem:[%s2837_s24 + $0x350] sm:$0xff] %v995_v41 }
 0x1a7   : > { %1825 = vst [vmem:[%s2837_s24 + $0x348] sm:$0xff] %v989_v42 }
 0x1aa   : > { %1270 = vperm.xlu2 %2466, %v2383_v43   ;;  %1264 = vperm.xlu1 %2465, %v2381_v44  }
 0x1ab   : > { %1258 = vperm.xlu0 %4, %v2379_v45  }
 0x1ac   : > { %v1073_v46 = vpop.permute.xlu2 %1072  ;;  %v1013_v47 = vpop.permute.xlu1 %1012 }
 0x1ad   : > { %v1007_v48 = vpop.permute.xlu0 %1006  ;;  %1853 = vst [vmem:[%s2837_s24 + $0x438] sm:$0xff] %v1073_v46 }
 0x1ae   : > { %1833 = vst [vmem:[%s2837_s24 + $0x368] sm:$0xff] %v1013_v47 }
 0x1af   : > { %1831 = vst [vmem:[%s2837_s24 + $0x360] sm:$0xff] %v1007_v48 }
 0x1b2   : > { %1288 = vperm.xlu2 %2466, %v2389_v49   ;;  %1282 = vperm.xlu1 %2465, %v2387_v50  }
 0x1b3   : > { %1276 = vperm.xlu0 %4, %v2385_v51  }
 0x1b4   : > { %v1091_v52 = vpop.permute.xlu2 %1090  ;;  %v1031_v53 = vpop.permute.xlu1 %1030 }
 0x1b5   : > { %v1025_v54 = vpop.permute.xlu0 %1024  ;;  %1859 = vst [vmem:[%s2837_s24 + $0x450] sm:$0xff] %v1091_v52 }
 0x1b6   : > { %1839 = vst [vmem:[%s2837_s24 + $0x400] sm:$0xff] %v1031_v53 }
 0x1b7   : > { %1837 = vst [vmem:[%s2837_s24 + $0x378] sm:$0xff] %v1025_v54 }
 0x1ba   : > { %1306 = vperm.xlu2 %2466, %v2395_v55   ;;  %1300 = vperm.xlu1 %2465, %v2393_v56  }
 0x1bb   : > { %1294 = vperm.xlu0 %4, %v2391_v57  }
 0x1bc   : > { %v1109_v58 = vpop.permute.xlu2 %1108  ;;  %v1049_v59 = vpop.permute.xlu1 %1048 }
 0x1bd   : > { %v1043_v60 = vpop.permute.xlu0 %1042  ;;  %1865 = vst [vmem:[%s2837_s24 + $0x468] sm:$0xff] %v1109_v58 }
 0x1be   : > { %1845 = vst [vmem:[%s2837_s24 + $0x418] sm:$0xff] %v1049_v59 }
 0x1bf   : > { %1843 = vst [vmem:[%s2837_s24 + $0x410] sm:$0xff] %v1043_v60 }
 0x1c2   : > { %1324 = vperm.xlu2 %2466, %v2401_v61   ;;  %1318 = vperm.xlu1 %2465, %v2399_v62  }
 0x1c3   : > { %1312 = vperm.xlu0 %4, %v2397_v63  }
 0x1c4   : > { %v1127_v0 = vpop.permute.xlu2 %1126  ;;  %v1067_v2 = vpop.permute.xlu1 %1066 }
 0x1c5   : > { %v1061_v3 = vpop.permute.xlu0 %1060  ;;  %1871 = vst [vmem:[%s2837_s24 + $0x500] sm:$0xff] %v1127_v0 }
 0x1c6   : > { %1851 = vst [vmem:[%s2837_s24 + $0x430] sm:$0xff] %v1067_v2 }
 0x1c7   : > { %1849 = vst [vmem:[%s2837_s24 + $0x428] sm:$0xff] %v1061_v3 }
 0x1ca   : > { %1342 = vperm.xlu2 %2466, %v2407_v4   ;;  %1336 = vperm.xlu1 %2465, %v2405_v5  }
 0x1cb   : > { %1330 = vperm.xlu0 %4, %v2403_v6  }
 0x1cc   : > { %v1145_v7 = vpop.permute.xlu2 %1144  ;;  %v1085_v8 = vpop.permute.xlu1 %1084 }
 0x1cd   : > { %v1079_v9 = vpop.permute.xlu0 %1078  ;;  %1877 = vst [vmem:[%s2837_s24 + $0x518] sm:$0xff] %v1145_v7 }
 0x1ce   : > { %1857 = vst [vmem:[%s2837_s24 + $0x448] sm:$0xff] %v1085_v8 }
 0x1cf   : > { %1855 = vst [vmem:[%s2837_s24 + $0x440] sm:$0xff] %v1079_v9 }
 0x1d2   : > { %1360 = vperm.xlu2 %2466, %v2413_v10   ;;  %1354 = vperm.xlu1 %2465, %v2411_v11  }
 0x1d3   : > { %1348 = vperm.xlu0 %4, %v2409_v12  }
 0x1d4   : > { %v1163_v13 = vpop.permute.xlu2 %1162  ;;  %v1103_v14 = vpop.permute.xlu1 %1102 }
 0x1d5   : > { %v1097_v15 = vpop.permute.xlu0 %1096  ;;  %1883 = vst [vmem:[%s2837_s24 + $0x530] sm:$0xff] %v1163_v13 }
 0x1d6   : > { %1863 = vst [vmem:[%s2837_s24 + $0x460] sm:$0xff] %v1103_v14 }
 0x1d7   : > { %1861 = vst [vmem:[%s2837_s24 + $0x458] sm:$0xff] %v1097_v15 }
 0x1da   : > { %1378 = vperm.xlu2 %2466, %v2419_v16   ;;  %1372 = vperm.xlu1 %2465, %v2417_v17  }
 0x1db   : > { %1366 = vperm.xlu0 %4, %v2415_v18  }
 0x1dc   : > { %v1181_v19 = vpop.permute.xlu2 %1180  ;;  %v1121_v20 = vpop.permute.xlu1 %1120 }
 0x1dd   : > { %v1115_v21 = vpop.permute.xlu0 %1114  ;;  %1889 = vst [vmem:[%s2837_s24 + $0x548] sm:$0xff] %v1181_v19 }
 0x1de   : > { %1869 = vst [vmem:[%s2837_s24 + $0x478] sm:$0xff] %v1121_v20 }
 0x1df   : > { %1867 = vst [vmem:[%s2837_s24 + $0x470] sm:$0xff] %v1115_v21 }
 0x1e2   : > { %1396 = vperm.xlu2 %2466, %v2425_v22   ;;  %1390 = vperm.xlu1 %2465, %v2423_v23  }
 0x1e3   : > { %1384 = vperm.xlu0 %4, %v2421_v24  }
 0x1e4   : > { %v1199_v25 = vpop.permute.xlu2 %1198  ;;  %v1139_v26 = vpop.permute.xlu1 %1138 }
 0x1e5   : > { %v1133_v27 = vpop.permute.xlu0 %1132  ;;  %1895 = vst [vmem:[%s2837_s24 + $0x560] sm:$0xff] %v1199_v25 }
 0x1e6   : > { %1875 = vst [vmem:[%s2837_s24 + $0x510] sm:$0xff] %v1139_v26 }
 0x1e7   : > { %1873 = vst [vmem:[%s2837_s24 + $0x508] sm:$0xff] %v1133_v27 }
 0x1ea   : > { %1408 = vperm.xlu1 %2465, %v2429_v28  }
 0x1eb   : > { %1402 = vperm.xlu0 %4, %v2427_v29  }
 0x1ec   : > { %v1217_v30 = vpop.permute.xlu2 %1216  ;;  %v1157_v31 = vpop.permute.xlu1 %1156 }
 0x1ed   : > { %v1151_v32 = vpop.permute.xlu0 %1150  ;;  %1901 = vst [vmem:[%s2837_s24 + $0x578] sm:$0xff] %v1217_v30 }
 0x1ee   : > { %1881 = vst [vmem:[%s2837_s24 + $0x528] sm:$0xff] %v1157_v31 }
 0x1ef   : > { %1879 = vst [vmem:[%s2837_s24 + $0x520] sm:$0xff] %v1151_v32 }
 0x1f4   : > { %v1235_v33 = vpop.permute.xlu2 %1234  ;;  %v1175_v34 = vpop.permute.xlu1 %1174 }
 0x1f5   : > { %v1169_v35 = vpop.permute.xlu0 %1168  ;;  %1907 = vst [vmem:[%s2837_s24 + $0x610] sm:$0xff] %v1235_v33 }
 0x1f6   : > { %1887 = vst [vmem:[%s2837_s24 + $0x540] sm:$0xff] %v1175_v34 }
 0x1f7   : > { %1885 = vst [vmem:[%s2837_s24 + $0x538] sm:$0xff] %v1169_v35 }
 0x1fc   : > { %v1253_v36 = vpop.permute.xlu2 %1252  ;;  %v1193_v37 = vpop.permute.xlu1 %1192 }
 0x1fd   : > { %v1187_v38 = vpop.permute.xlu0 %1186  ;;  %1913 = vst [vmem:[%s2837_s24 + $0x628] sm:$0xff] %v1253_v36 }
 0x1fe   : > { %1893 = vst [vmem:[%s2837_s24 + $0x558] sm:$0xff] %v1193_v37 }
 0x1ff   : > { %1891 = vst [vmem:[%s2837_s24 + $0x550] sm:$0xff] %v1187_v38 }
 0x204   : > { %v1271_v39 = vpop.permute.xlu2 %1270  ;;  %v1211_v40 = vpop.permute.xlu1 %1210 }
 0x205   : > { %v1205_v41 = vpop.permute.xlu0 %1204  ;;  %1919 = vst [vmem:[%s2837_s24 + $0x640] sm:$0xff] %v1271_v39 }
 0x206   : > { %1899 = vst [vmem:[%s2837_s24 + $0x570] sm:$0xff] %v1211_v40 }
 0x207   : > { %1897 = vst [vmem:[%s2837_s24 + $0x568] sm:$0xff] %v1205_v41 }
 0x20c   : > { %v1289_v42 = vpop.permute.xlu2 %1288  ;;  %v1229_v43 = vpop.permute.xlu1 %1228 }
 0x20d   : > { %v1223_v44 = vpop.permute.xlu0 %1222  ;;  %1925 = vst [vmem:[%s2837_s24 + $0x658] sm:$0xff] %v1289_v42 }
 0x20e   : > { %1905 = vst [vmem:[%s2837_s24 + $0x608] sm:$0xff] %v1229_v43 }
 0x20f   : > { %1903 = vst [vmem:[%s2837_s24 + $0x600] sm:$0xff] %v1223_v44 }
 0x214   : > { %v1307_v45 = vpop.permute.xlu2 %1306  ;;  %v1247_v46 = vpop.permute.xlu1 %1246 }
 0x215   : > { %v1241_v47 = vpop.permute.xlu0 %1240  ;;  %1931 = vst [vmem:[%s2837_s24 + $0x670] sm:$0xff] %v1307_v45 }
 0x216   : > { %1911 = vst [vmem:[%s2837_s24 + $0x620] sm:$0xff] %v1247_v46 }
 0x217   : > { %1909 = vst [vmem:[%s2837_s24 + $0x618] sm:$0xff] %v1241_v47 }
 0x21c   : > { %v1325_v48 = vpop.permute.xlu2 %1324  ;;  %v1265_v49 = vpop.permute.xlu1 %1264 }
 0x21d   : > { %v1259_v50 = vpop.permute.xlu0 %1258  ;;  %1937 = vst [vmem:[%s2837_s24 + $0x708] sm:$0xff] %v1325_v48 }
 0x21e   : > { %1917 = vst [vmem:[%s2837_s24 + $0x638] sm:$0xff] %v1265_v49 }
 0x21f   : > { %1915 = vst [vmem:[%s2837_s24 + $0x630] sm:$0xff] %v1259_v50 }
 0x224   : > { %v1343_v51 = vpop.permute.xlu2 %1342  ;;  %v1283_v52 = vpop.permute.xlu1 %1282 }
 0x225   : > { %v1277_v53 = vpop.permute.xlu0 %1276  ;;  %1943 = vst [vmem:[%s2837_s24 + $0x720] sm:$0xff] %v1343_v51 }
 0x226   : > { %1923 = vst [vmem:[%s2837_s24 + $0x650] sm:$0xff] %v1283_v52 }
 0x227   : > { %1921 = vst [vmem:[%s2837_s24 + $0x648] sm:$0xff] %v1277_v53 }
 0x22c   : > { %v1361_v54 = vpop.permute.xlu2 %1360  ;;  %v1301_v55 = vpop.permute.xlu1 %1300 }
 0x22d   : > { %v1295_v56 = vpop.permute.xlu0 %1294  ;;  %1949 = vst [vmem:[%s2837_s24 + $0x738] sm:$0xff] %v1361_v54 }
 0x22e   : > { %1929 = vst [vmem:[%s2837_s24 + $0x668] sm:$0xff] %v1301_v55 }
 0x22f   : > { %1927 = vst [vmem:[%s2837_s24 + $0x660] sm:$0xff] %v1295_v56 }
 0x234   : > { %v1379_v57 = vpop.permute.xlu2 %1378  ;;  %v1319_v58 = vpop.permute.xlu1 %1318 }
 0x235   : > { %v1313_v59 = vpop.permute.xlu0 %1312  ;;  %1955 = vst [vmem:[%s2837_s24 + $0x750] sm:$0xff] %v1379_v57 }
 0x236   : > { %1935 = vst [vmem:[%s2837_s24 + $0x700] sm:$0xff] %v1319_v58 }
 0x237   : > { %1933 = vst [vmem:[%s2837_s24 + $0x678] sm:$0xff] %v1313_v59 }
 0x23c   : > { %v1397_v60 = vpop.permute.xlu2 %1396  ;;  %v1337_v61 = vpop.permute.xlu1 %1336 }
 0x23d   : > { %v1331_v62 = vpop.permute.xlu0 %1330  ;;  %1961 = vst [vmem:[%s2837_s24 + $0x768] sm:$0xff] %v1397_v60 }
 0x23e   : > { %1941 = vst [vmem:[%s2837_s24 + $0x718] sm:$0xff] %v1337_v61 }
 0x23f   : > { %1939 = vst [vmem:[%s2837_s24 + $0x710] sm:$0xff] %v1331_v62 }
 0x244   : > { %v1355_v63 = vpop.permute.xlu1 %1354 }
 0x245   : > { %v1349_v0 = vpop.permute.xlu0 %1348  ;;  %1947 = vst [vmem:[%s2837_s24 + $0x730] sm:$0xff] %v1355_v63 }
 0x246   : > { %1945 = vst [vmem:[%s2837_s24 + $0x728] sm:$0xff] %v1349_v0 }
 0x24c   : > { %v1373_v2 = vpop.permute.xlu1 %1372 }
 0x24d   : > { %v1367_v3 = vpop.permute.xlu0 %1366  ;;  %1953 = vst [vmem:[%s2837_s24 + $0x748] sm:$0xff] %v1373_v2 }
 0x24e   : > { %1951 = vst [vmem:[%s2837_s24 + $0x740] sm:$0xff] %v1367_v3 }
 0x254   : > { %v1391_v4 = vpop.permute.xlu1 %1390 }
 0x255   : > { %v1385_v5 = vpop.permute.xlu0 %1384  ;;  %1959 = vst [vmem:[%s2837_s24 + $0x760] sm:$0xff] %v1391_v4 }
 0x256   : > { %1957 = vst [vmem:[%s2837_s24 + $0x758] sm:$0xff] %v1385_v5 }
 0x25c   : > { %v1409_v6 = vpop.permute.xlu1 %1408 }
 0x25d   : > { %v1403_v7 = vpop.permute.xlu0 %1402  ;;  %1965 = vst [vmem:[%s2837_s24 + $0x778] sm:$0xff] %v1409_v6 }
 0x25e   : > { %1963 = vst [vmem:[%s2837_s24 + $0x770] sm:$0xff] %v1403_v7 }
 0x25f PF: > { %s10_s8 = sadd.s32 1, %s2489_s8   ;;  %s3070_s6 = smov %s2485_s7 }
 0x260   : > { %p7_p5 = scmp.ge.s32.totalorder %s10_s8, 4   ;;  %s3071_s7 = smov %s3073_s10 }
 0x262   :  { %9 = sbr.rel (!%p7_p5) target bundleno = 7 (0x7), region = 372 }

</bundles_post_ra>
